<compile_context>
chip_gen: v7x
topology: tpu7x:2x2x1
jax: 0.10.0
libtpu: 0.0.40
codegen_flags: <defaults>
</compile_context>

<pallas_src>
import functools

import numpy as np
import jax
import jax.numpy as jnp
from jax.experimental import pallas as pl
from jax.experimental.pallas import tpu as pltpu


# ----------------------------------------------------------------------------
# host-side constant builders (static numpy; weight-dependent parts use jnp so
# the wrapper stays jit-traceable)
# ----------------------------------------------------------------------------
def _upsample_matrix(n_in, scale=2):
    """1-D stencil of nn.Upsample(scale_factor=2, mode='bilinear', align_corners=False)."""
    n_out = n_in * scale
    U = np.zeros((n_out, n_in), np.float32)
    for i in range(n_out):
        src = (i + 0.5) / scale - 0.5
        i0 = int(np.floor(src))
        frac = src - i0
        U[i, min(max(i0, 0), n_in - 1)] += 1.0 - frac
        U[i, min(max(i0 + 1, 0), n_in - 1)] += frac
    return U


def _band_placement(Wdim, k=3):
    """T[dw, c, w] = 1 iff c == w + dw - 1 and 0 <= c < Wdim.

    Column index c addresses the *interior* (lane-aligned, no column halo);
    out-of-range taps are dropped, which is exactly zero padding."""
    T = np.zeros((k, Wdim, Wdim), np.float32)
    for dw in range(k):
        for w in range(Wdim):
            c = w + dw - 1
            if 0 <= c < Wdim:
                T[dw, c, w] = 1.0
    return T


def _fold_placement():
    """A[d, p, k] = 1 iff k == 2*d + p - 1: maps the 4-tap/stride-2 kernel onto a
    3-tap kernel over the space-to-depth-folded grid (invalid taps stay zero)."""
    A = np.zeros((3, 2, 4), np.float32)
    for d in range(3):
        for p in range(2):
            k = 2 * d + p - 1
            if 0 <= k < 4:
                A[d, p, k] = 1.0
    return A


def _banded_weights_down(w1, Wh):
    """Conv2d(Cin->inner, k=4, s=2, p=1) -> 3 banded matrices over the folded input.

    B1[dh][c*4Cin + (ph*2+pw)*Cin + ci, w*inner + co] = w1[co, ci, 2dh+ph-1, 2(c-w+1)+pw-1]
    """
    inner, Cin = w1.shape[0], w1.shape[1]
    A = jnp.asarray(_fold_placement())
    # W3[dh, dw, ph, pw, ci, co]
    W3 = jnp.einsum("dpk,eql,oikl->depqio", A, A, w1).reshape(3, 3, 4 * Cin, inner)
    T = jnp.asarray(_band_placement(Wh))                      # (3, Wh, Wh)
    B1 = jnp.einsum("tpj,dtfc->dpfjc", T, W3)
    return B1.reshape(3, Wh * 4 * Cin, Wh * inner)


def _banded_weights_up(w2, W):
    """Conv2d(inner->outer, k=3, s=1, p=1) -> 3 banded matrices (lane layout w*C + c)."""
    outer, inner = w2.shape[0], w2.shape[1]
    W2 = jnp.transpose(w2, (2, 3, 1, 0))                      # (dh, dw, ci, co)
    T = jnp.asarray(_band_placement(W))                       # (3, W, W)
    B2 = jnp.einsum("tpj,dtfc->dpfjc", T, W2)
    return B2.reshape(3, W * inner, W * outer)


def _skip_lane_matrices(Wh, Cin, outer):
    """E[ph][folded lane (wh,ph,pw,ci) -> output lane (2wh+pw)*Ctot + ci]."""
    C1 = 4 * Cin
    Ctot = Cin + outer
    W = 2 * Wh
    E = np.zeros((2, Wh * C1, W * Ctot), np.float32)
    for ph in range(2):
        for wh in range(Wh):
            for pw in range(2):
                for ci in range(Cin):
                    E[ph, wh * C1 + (ph * 2 + pw) * Cin + ci,
                      (2 * wh + pw) * Ctot + ci] = 1.0
    return E


def _skip_row_matrices(Hh, B):
    """R[ph] = kron(I_B, row-scatter): output row 2hh+ph <- folded row hh."""
    H = 2 * Hh
    R = np.zeros((2, H, Hh), np.float32)
    for ph in range(2):
        for hh in range(Hh):
            R[ph, 2 * hh + ph, hh] = 1.0
    RB = np.stack([np.kron(np.eye(B, dtype=np.float32), R[ph]) for ph in range(2)])
    return RB                                                  # (2, B*H, B*Hh)


# ----------------------------------------------------------------------------
# fused Pallas kernel
# ----------------------------------------------------------------------------
def _make_fused_kernel(B, Hh, Wh, H, W, Cin, inner, outer, compute_dtype):
    C1 = 4 * Cin
    K1 = Wh * C1            # folded lane width == down-conv K (lane-dense)
    K2 = W * inner          # upsampled lane width == up-conv K (lane-dense)
    WO = W * outer
    Ctot = Cin + outer
    f32 = jnp.float32
    cdt = compute_dtype

    def kernel(xf_ref, B1_ref, b1_ref, uh_ref, mw_ref, B2_ref, b2_ref,
               pavg_ref, srow_ref, rsk_ref, esk_ref, emd_ref,
               o_ref, pad1_ref, pad2_ref):
        xf = xf_ref[...]                                     # (B, Hh, K1) raw folded input, f32
        xf2d = xf.reshape(B * Hh, K1)

        # ---- skip branch: unfold the raw input straight into the output layout
        #      (f32 0/1 row-scatter + lane-permutation matmuls -> exact passthrough,
        #       and x is only read from HBM once, in its folded layout) ----------
        skip = jnp.dot(rsk_ref[0],
                       jnp.dot(xf2d, esk_ref[0], preferred_element_type=f32),
                       preferred_element_type=f32)
        skip += jnp.dot(rsk_ref[1],
                        jnp.dot(xf2d, esk_ref[1], preferred_element_type=f32),
                        preferred_element_type=f32)          # (B*H, W*Ctot)

        # ---- down: LeakyReLU(0.2) (f32 VPU) + folded 4x4/s2 conv = 3 banded matmuls
        xa = jnp.where(xf >= 0.0, xf, 0.2 * xf)              # leakyrelu(0)=0 -> pad safe
        zrow1 = jnp.zeros((B, 1, K1), cdt)
        pad1_ref[:, 0:1, :] = zrow1                          # only the 2 halo rows are
        pad1_ref[:, Hh + 1:Hh + 2, :] = zrow1                #   zeroed (interior is fully
        pad1_ref[:, 1:Hh + 1, :] = xa.astype(cdt)            #   overwritten; single cast)
        acc1 = jnp.dot(pad1_ref[:, 0:Hh, :].reshape(B * Hh, K1), B1_ref[0],
                       preferred_element_type=f32)
        acc1 += jnp.dot(pad1_ref[:, 1:Hh + 1, :].reshape(B * Hh, K1), B1_ref[1],
                        preferred_element_type=f32)
        acc1 += jnp.dot(pad1_ref[:, 2:Hh + 2, :].reshape(B * Hh, K1), B1_ref[2],
                        preferred_element_type=f32)
        y1 = acc1 + b1_ref[...]                              # (B*Hh, Wh*inner) f32

        # ---- ReLU + bilinear x2 upsample (row stencil, then column stencil) ----
        y1c = jnp.maximum(y1, 0.0).astype(cdt)
        t = jnp.dot(uh_ref[...], y1c, preferred_element_type=f32)           # (B*H, Wh*inner)
        up = jnp.dot(t.astype(cdt), mw_ref[...], preferred_element_type=f32)  # (B*H, K2)

        # ---- 3x3/s1 conv = 3 banded matmuls ------------------------------------
        zrow2 = jnp.zeros((B, 1, K2), cdt)
        pad2_ref[:, 0:1, :] = zrow2
        pad2_ref[:, H + 1:H + 2, :] = zrow2
        pad2_ref[:, 1:H + 1, :] = up.reshape(B, H, K2).astype(cdt)
        acc2 = jnp.dot(pad2_ref[:, 0:H, :].reshape(B * H, K2), B2_ref[0],
                       preferred_element_type=f32)
        acc2 += jnp.dot(pad2_ref[:, 1:H + 1, :].reshape(B * H, K2), B2_ref[1],
                        preferred_element_type=f32)
        acc2 += jnp.dot(pad2_ref[:, 2:H + 2, :].reshape(B * H, K2), B2_ref[2],
                        preferred_element_type=f32)
        y2 = acc2 + b2_ref[...]                              # (B*H, W*outer) f32

        # ---- InstanceNorm2d (affine=False, eps=1e-5), per image, f32 stats ------
        # Pavg averages over w within each lane-channel; Srow = kron(I_B, ones(H,H))
        # sums/broadcasts over the rows of each image (no cross-image mixing).
        mean = jnp.dot(srow_ref[...],
                       jnp.dot(y2, pavg_ref[...], preferred_element_type=f32),
                       preferred_element_type=f32)           # (B*H, WO) broadcast mean
        d = y2 - mean
        var = jnp.dot(srow_ref[...],
                      jnp.dot(d * d, pavg_ref[...], preferred_element_type=f32),
                      preferred_element_type=f32)
        yn = d * jax.lax.rsqrt(var + 1e-5)

        # ---- channel concat with the skip, as ONE lane-dense store ---------------
        out = skip + jnp.dot(yn, emd_ref[...], preferred_element_type=f32)
        o_ref[...] = out.reshape(B, H, W * Ctot)

    return kernel


# ----------------------------------------------------------------------------
# wrapper: UnetSkipConnectionBlock(outer_nc, inner_nc, innermost=True,
#                                  norm_layer=InstanceNorm2d).forward
# ----------------------------------------------------------------------------
def unet_innermost_block_forward(x_nchw, params, *, use_bf16=True, batch_block=None):
    w1, b1, w2, b2 = params["w1"], params["b1"], params["w2"], params["b2"]
    N, Cin, H, W = x_nchw.shape
    inner = w1.shape[0]
    outer = w2.shape[0]
    assert H % 2 == 0 and W % 2 == 0
    Hh, Wh = H // 2, W // 2
    C1 = 4 * Cin
    Ctot = Cin + outer
    cdt = jnp.bfloat16 if use_bf16 else jnp.float32

    # batch stacking: B images per grid step, rows concatenated along the MXU M dim.
    # Prefer the largest divisor of N with B*Hh <= 256 while keeping >= 2 grid steps
    # (so both v7x TensorCores get work when possible).
    if batch_block is None:
        divs = [b for b in range(1, N + 1) if N % b == 0]
        cands = ([b for b in divs if b * Hh <= 256 and N // b >= 2]
                 or [b for b in divs if b * Hh <= 256] or [1])
        B = max(cands)
    else:
        B = int(batch_block)
    assert N % B == 0

    # single input relayout (no expansion): space-to-depth fold.  The skip view is
    # reconstructed in-kernel, so x is not read from HBM a second time.
    x_nhwc = jnp.transpose(x_nchw, (0, 2, 3, 1))
    xf2 = (x_nhwc.reshape(N, Hh, 2, Wh, 2, Cin)
           .transpose(0, 1, 3, 2, 4, 5)
           .reshape(N, Hh, Wh * C1)).astype(jnp.float32)

    # weight / stencil / permutation matrices (small, built once per trace)
    B1 = _banded_weights_down(w1, Wh).astype(cdt)             # (3, Wh*4Cin, Wh*inner)
    B2 = _banded_weights_up(w2, W).astype(cdt)                # (3, W*inner,  W*outer)
    b1_lane = jnp.tile(b1, Wh).reshape(1, Wh * inner).astype(jnp.float32)
    b2_lane = jnp.tile(b2, W).reshape(1, W * outer).astype(jnp.float32)
    UhB = jnp.asarray(np.kron(np.eye(B, dtype=np.float32),
                              _upsample_matrix(Hh))).astype(cdt)   # (B*H, B*Hh)
    Mw = jnp.asarray(np.kron(_upsample_matrix(Wh).T,
                             np.eye(inner, dtype=np.float32))).astype(cdt)
    Pavg = jnp.asarray(np.kron(np.ones((W, W), np.float32),
                               np.eye(outer, dtype=np.float32)) / (H * W))
    Srow = jnp.asarray(np.kron(np.eye(B, dtype=np.float32),
                               np.ones((H, H), np.float32)))       # (B*H, B*H)
    Rsk = jnp.asarray(_skip_row_matrices(Hh, B))              # (2, B*H, B*Hh) f32
    Esk = jnp.asarray(_skip_lane_matrices(Wh, Cin, outer))    # (2, Wh*4Cin, W*Ctot) f32
    Emd = jnp.asarray(np.kron(np.eye(W, dtype=np.float32),
                              np.concatenate([np.zeros((outer, Cin), np.float32),
                                              np.eye(outer, dtype=np.float32)], 1)))

    kernel = _make_fused_kernel(B, Hh, Wh, H, W, Cin, inner, outer, cdt)

    out3 = pl.pallas_call(
        kernel,
        out_shape=jax.ShapeDtypeStruct((N, H, W * Ctot), jnp.float32),
        grid=(N // B,),
        in_specs=[
            pl.BlockSpec((B, Hh, Wh * C1), lambda n: (n, 0, 0)),          # folded input
            pl.BlockSpec((3, Wh * C1, Wh * inner), lambda n: (0, 0, 0)),  # down banded W
            pl.BlockSpec((1, Wh * inner), lambda n: (0, 0)),              # down bias
            pl.BlockSpec((B * H, B * Hh), lambda n: (0, 0)),              # row upsample
            pl.BlockSpec((Wh * inner, W * inner), lambda n: (0, 0)),      # col upsample
            pl.BlockSpec((3, W * inner, W * outer), lambda n: (0, 0, 0)), # up banded W
            pl.BlockSpec((1, W * outer), lambda n: (0, 0)),               # up bias
            pl.BlockSpec((W * outer, W * outer), lambda n: (0, 0)),       # Pavg
            pl.BlockSpec((B * H, B * H), lambda n: (0, 0)),               # Srow
            pl.BlockSpec((2, B * H, B * Hh), lambda n: (0, 0, 0)),        # skip row scatter
            pl.BlockSpec((2, Wh * C1, W * Ctot), lambda n: (0, 0, 0)),    # skip lane perm
            pl.BlockSpec((W * outer, W * Ctot), lambda n: (0, 0)),        # concat placement
        ],
        out_specs=pl.BlockSpec((B, H, W * Ctot), lambda n: (n, 0, 0)),
        scratch_shapes=[
            pltpu.VMEM((B, Hh + 2, Wh * C1), cdt),   # padded folded input (row halo only)
            pltpu.VMEM((B, H + 2, W * inner), cdt),  # padded upsampled act (row halo only)
        ],
        compiler_params=pltpu.CompilerParams(
            dimension_semantics=("parallel",),
            vmem_limit_bytes=32 * 1024 * 1024,
        ),
    )(xf2, B1, b1_lane, UhB, Mw, B2, b2_lane, Pavg, Srow, Rsk, Esk, Emd)

    out = out3.reshape(N, H, W, Ctot)
    return jnp.transpose(out, (0, 3, 1, 2))                   # back to NCHW


# ----------------------------------------------------------------------------
# Pure-JAX reference (PyTorch-equivalent semantics, f32)
# ----------------------------------------------------------------------------
def reference_forward(x, params):
    w1, b1, w2, b2 = params["w1"], params["b1"], params["w2"], params["b2"]
    dn = ("NCHW", "OIHW", "NCHW")
    h = jnp.where(x >= 0.0, x, 0.2 * x)
    h = jax.lax.conv_general_dilated(h, w1, (2, 2), ((1, 1), (1, 1)),
                                     dimension_numbers=dn) + b1[None, :, None, None]
    h = jnp.maximum(h, 0.0)
    Uh = jnp.asarray(_upsample_matrix(h.shape[2]))
    h = jnp.einsum("oh,nchw->ncow", Uh, h)
    Uw = jnp.asarray(_upsample_matrix(h.shape[3]))
    h = jnp.einsum("pw,ncow->ncop", Uw, h)
    h = jax.lax.conv_general_dilated(h, w2, (1, 1), ((1, 1), (1, 1)),
                                     dimension_numbers=dn) + b2[None, :, None, None]
    mean = h.mean(axis=(2, 3), keepdims=True)
    var = ((h - mean) ** 2).mean(axis=(2, 3), keepdims=True)
    h = (h - mean) / jnp.sqrt(var + 1e-5)
    return jnp.concatenate([x, h], axis=1)


# ----------------------------------------------------------------------------
if __name__ == "__main__":
    key = jax.random.PRNGKey(0)
    N, Cin, H, W = 4, 4, 16, 16            # input_nc = outer_nc = Cin for innermost test
    outer_nc, inner_nc = Cin, 8
    k1, k2, k3, k4, k5 = jax.random.split(key, 5)
    params = dict(
        w1=0.1 * jax.random.normal(k1, (inner_nc, Cin, 4, 4), jnp.float32),
        b1=0.1 * jax.random.normal(k2, (inner_nc,), jnp.float32),
        w2=0.1 * jax.random.normal(k3, (outer_nc, inner_nc, 3, 3), jnp.float32),
        b2=0.1 * jax.random.normal(k4, (outer_nc,), jnp.float32),
    )
    x = jax.random.normal(k5, (N, Cin, H, W), jnp.float32)

    # f32 strict path with explicit batch-stacking (B=2 -> grid=(2,));
    # bf16 fast path with auto-chosen batch block.
    fwd_f32 = jax.jit(functools.partial(unet_innermost_block_forward,
                                        use_bf16=False, batch_block=2))
    fwd_bf16 = jax.jit(functools.partial(unet_innermost_block_forward, use_bf16=True))

    out_f32 = jax.block_until_ready(fwd_f32(x, params))
    out_bf16 = jax.block_until_ready(fwd_bf16(x, params))

    ref = reference_forward(x, params)
    assert out_f32.shape == (N, Cin + outer_nc, H, W), out_f32.shape
    assert out_bf16.shape == (N, Cin + outer_nc, H, W), out_bf16.shape
    # strict check on the f32 path (algorithmic correctness)
    np.testing.assert_allclose(np.asarray(out_f32), np.asarray(ref), rtol=2e-4, atol=2e-4)
    # looser check on the bf16-MXU path (mixed precision)
    np.testing.assert_allclose(np.asarray(out_bf16), np.asarray(ref), rtol=5e-2, atol=5e-2)
    print("KERNEL_OK")
</pallas_src>

<mosaic_0001>
module attributes {stable_mosaic.version = 11 : i64} {
  func.func @kernel(%arg0: i32, %arg1: memref<2x8x128xf32, #tpu.memory_space<vmem>>, %arg2: memref<3x128x64xf32, #tpu.memory_space<vmem>>, %arg3: memref<1x64xf32, #tpu.memory_space<vmem>>, %arg4: memref<32x16xf32, #tpu.memory_space<vmem>>, %arg5: memref<64x128xf32, #tpu.memory_space<vmem>>, %arg6: memref<3x128x64xf32, #tpu.memory_space<vmem>>, %arg7: memref<1x64xf32, #tpu.memory_space<vmem>>, %arg8: memref<64x64xf32, #tpu.memory_space<vmem>>, %arg9: memref<32x32xf32, #tpu.memory_space<vmem>>, %arg10: memref<2x32x16xf32, #tpu.memory_space<vmem>>, %arg11: memref<2x128x128xf32, #tpu.memory_space<vmem>>, %arg12: memref<64x128xf32, #tpu.memory_space<vmem>>, %arg13: memref<2x16x128xf32, #tpu.memory_space<vmem>>, %arg14: memref<2x10x128xf32, #tpu.memory_space<vmem>>, %arg15: memref<2x18x128xf32, #tpu.memory_space<vmem>>) attributes {dimension_semantics = [#tpu.dimension_semantics<parallel>], iteration_bounds = array<i64: 2>, scalar_prefetch = 0 : i64, scratch_operands = 2 : i64, tpu.core_type = #tpu.core_type<tc>, window_params = [{transform_indices = @transform_0, window_bounds = array<i64: 2, 8, 128>}, {pipeline_mode = #tpu.pipeline_mode<synchronous>, transform_indices = @transform_1, window_bounds = array<i64: 3, 128, 64>}, {pipeline_mode = #tpu.pipeline_mode<synchronous>, transform_indices = @transform_2, window_bounds = array<i64: 1, 64>}, {pipeline_mode = #tpu.pipeline_mode<synchronous>, transform_indices = @transform_3, window_bounds = array<i64: 32, 16>}, {pipeline_mode = #tpu.pipeline_mode<synchronous>, transform_indices = @transform_4, window_bounds = array<i64: 64, 128>}, {pipeline_mode = #tpu.pipeline_mode<synchronous>, transform_indices = @transform_5, window_bounds = array<i64: 3, 128, 64>}, {pipeline_mode = #tpu.pipeline_mode<synchronous>, transform_indices = @transform_6, window_bounds = array<i64: 1, 64>}, {pipeline_mode = #tpu.pipeline_mode<synchronous>, transform_indices = @transform_7, window_bounds = array<i64: 64, 64>}, {pipeline_mode = #tpu.pipeline_mode<synchronous>, transform_indices = @transform_8, window_bounds = array<i64: 32, 32>}, {pipeline_mode = #tpu.pipeline_mode<synchronous>, transform_indices = @transform_9, window_bounds = array<i64: 2, 32, 16>}, {pipeline_mode = #tpu.pipeline_mode<synchronous>, transform_indices = @transform_10, window_bounds = array<i64: 2, 128, 128>}, {pipeline_mode = #tpu.pipeline_mode<synchronous>, transform_indices = @transform_11, window_bounds = array<i64: 64, 128>}, {transform_indices = @transform_12, window_bounds = array<i64: 2, 16, 128>}]} {
    %c0 = arith.constant 0 : index
    %c0_0 = arith.constant 0 : index
    %c0_1 = arith.constant 0 : index
    %0 = vector.load %arg1[%c0, %c0_0, %c0_1] : memref<2x8x128xf32, #tpu.memory_space<vmem>>, vector<2x8x128xf32>
    %1 = vector.shape_cast %0 : vector<2x8x128xf32> to vector<16x128xf32>
    %c0_2 = arith.constant 0 : index
    %c0_3 = arith.constant 0 : index
    %c0_4 = arith.constant 0 : index
    %2 = vector.load %arg10[%c0_2, %c0_3, %c0_4] : memref<2x32x16xf32, #tpu.memory_space<vmem>>, vector<1x32x16xf32>
    %3 = vector.shape_cast %2 : vector<1x32x16xf32> to vector<32x16xf32>
    %c0_5 = arith.constant 0 : index
    %c0_6 = arith.constant 0 : index
    %c0_7 = arith.constant 0 : index
    %4 = vector.load %arg11[%c0_5, %c0_6, %c0_7] : memref<2x128x128xf32, #tpu.memory_space<vmem>>, vector<1x128x128xf32>
    %5 = vector.shape_cast %4 : vector<1x128x128xf32> to vector<128x128xf32>
    %cst = arith.constant dense<0.000000e+00> : vector<16x128xf32>
    %6 = tpu.matmul %1, %5, %cst {dimension_numbers = #tpu.dot_dimension_numbers<[1], [0], [0], [1], [0, 0, 1, 1], [], []>} : vector<16x128xf32>, vector<128x128xf32>, vector<16x128xf32> -> vector<16x128xf32>
    %cst_8 = arith.constant dense<0.000000e+00> : vector<32x128xf32>
    %7 = tpu.matmul %3, %6, %cst_8 {dimension_numbers = #tpu.dot_dimension_numbers<[1], [0], [0], [1], [0, 0, 1, 1], [], []>} : vector<32x16xf32>, vector<16x128xf32>, vector<32x128xf32> -> vector<32x128xf32>
    %c1 = arith.constant 1 : index
    %c0_9 = arith.constant 0 : index
    %c0_10 = arith.constant 0 : index
    %8 = vector.load %arg10[%c1, %c0_9, %c0_10] : memref<2x32x16xf32, #tpu.memory_space<vmem>>, vector<1x32x16xf32>
    %9 = vector.shape_cast %8 : vector<1x32x16xf32> to vector<32x16xf32>
    %c1_11 = arith.constant 1 : index
    %c0_12 = arith.constant 0 : index
    %c0_13 = arith.constant 0 : index
    %10 = vector.load %arg11[%c1_11, %c0_12, %c0_13] : memref<2x128x128xf32, #tpu.memory_space<vmem>>, vector<1x128x128xf32>
    %11 = vector.shape_cast %10 : vector<1x128x128xf32> to vector<128x128xf32>
    %cst_14 = arith.constant dense<0.000000e+00> : vector<16x128xf32>
    %12 = tpu.matmul %1, %11, %cst_14 {dimension_numbers = #tpu.dot_dimension_numbers<[1], [0], [0], [1], [0, 0, 1, 1], [], []>} : vector<16x128xf32>, vector<128x128xf32>, vector<16x128xf32> -> vector<16x128xf32>
    %cst_15 = arith.constant dense<0.000000e+00> : vector<32x128xf32>
    %13 = tpu.matmul %9, %12, %cst_15 {dimension_numbers = #tpu.dot_dimension_numbers<[1], [0], [0], [1], [0, 0, 1, 1], [], []>} : vector<32x16xf32>, vector<16x128xf32>, vector<32x128xf32> -> vector<32x128xf32>
    %14 = arith.addf %7, %13 : vector<32x128xf32>
    %cst_16 = arith.constant 0.000000e+00 : f32
    %15 = vector.broadcast %cst_16 : f32 to vector<2x8x128xf32>
    %16 = arith.cmpf oge, %0, %15 : vector<2x8x128xf32>
    %cst_17 = arith.constant 2.000000e-01 : f32
    %17 = vector.broadcast %cst_17 : f32 to vector<2x8x128xf32>
    %18 = arith.mulf %17, %0 : vector<2x8x128xf32>
    %19 = arith.select %16, %0, %18 : vector<2x8x128xi1>, vector<2x8x128xf32>
    %cst_18 = arith.constant 0.000000e+00 : f32
    %20 = vector.broadcast %cst_18 : f32 to vector<2x1x128xf32>
    %c0_19 = arith.constant 0 : index
    %c0_20 = arith.constant 0 : index
    %c0_21 = arith.constant 0 : index
    %21 = vector.load %arg14[%c0_19, %c0_20, %c0_21] : memref<2x10x128xf32, #tpu.memory_space<vmem>>, vector<2x1x128xf32>
    tpu.vector_store %arg14[%c0_19, %c0_20, %c0_21], %20 {strides = array<i32>} : memref<2x10x128xf32, #tpu.memory_space<vmem>>, vector<2x1x128xf32>,
    %c0_22 = arith.constant 0 : index
    %c9 = arith.constant 9 : index
    %c0_23 = arith.constant 0 : index
    %22 = vector.load %arg14[%c0_22, %c9, %c0_23] : memref<2x10x128xf32, #tpu.memory_space<vmem>>, vector<2x1x128xf32>
    tpu.vector_store %arg14[%c0_22, %c9, %c0_23], %20 {strides = array<i32>} : memref<2x10x128xf32, #tpu.memory_space<vmem>>, vector<2x1x128xf32>,
    %c0_24 = arith.constant 0 : index
    %c1_25 = arith.constant 1 : index
    %c0_26 = arith.constant 0 : index
    %23 = vector.load %arg14[%c0_24, %c1_25, %c0_26] : memref<2x10x128xf32, #tpu.memory_space<vmem>>, vector<2x8x128xf32>
    tpu.vector_store %arg14[%c0_24, %c1_25, %c0_26], %19 {strides = array<i32>} : memref<2x10x128xf32, #tpu.memory_space<vmem>>, vector<2x8x128xf32>,
    %c0_27 = arith.constant 0 : index
    %c0_28 = arith.constant 0 : index
    %c0_29 = arith.constant 0 : index
    %24 = vector.load %arg14[%c0_27, %c0_28, %c0_29] : memref<2x10x128xf32, #tpu.memory_space<vmem>>, vector<2x8x128xf32>
    %25 = vector.shape_cast %24 : vector<2x8x128xf32> to vector<16x128xf32>
    %c0_30 = arith.constant 0 : index
    %c0_31 = arith.constant 0 : index
    %c0_32 = arith.constant 0 : index
    %26 = vector.load %arg2[%c0_30, %c0_31, %c0_32] : memref<3x128x64xf32, #tpu.memory_space<vmem>>, vector<1x128x64xf32>
    %27 = vector.shape_cast %26 : vector<1x128x64xf32> to vector<128x64xf32>
    %cst_33 = arith.constant dense<0.000000e+00> : vector<16x64xf32>
    %28 = tpu.matmul %25, %27, %cst_33 {dimension_numbers = #tpu.dot_dimension_numbers<[1], [0], [0], [1], [0, 0, 1, 1], [], []>} : vector<16x128xf32>, vector<128x64xf32>, vector<16x64xf32> -> vector<16x64xf32>
    %c0_34 = arith.constant 0 : index
    %c1_35 = arith.constant 1 : index
    %c0_36 = arith.constant 0 : index
    %29 = vector.load %arg14[%c0_34, %c1_35, %c0_36] : memref<2x10x128xf32, #tpu.memory_space<vmem>>, vector<2x8x128xf32>
    %30 = vector.shape_cast %29 : vector<2x8x128xf32> to vector<16x128xf32>
    %c1_37 = arith.constant 1 : index
    %c0_38 = arith.constant 0 : index
    %c0_39 = arith.constant 0 : index
    %31 = vector.load %arg2[%c1_37, %c0_38, %c0_39] : memref<3x128x64xf32, #tpu.memory_space<vmem>>, vector<1x128x64xf32>
    %32 = vector.shape_cast %31 : vector<1x128x64xf32> to vector<128x64xf32>
    %cst_40 = arith.constant dense<0.000000e+00> : vector<16x64xf32>
    %33 = tpu.matmul %30, %32, %cst_40 {dimension_numbers = #tpu.dot_dimension_numbers<[1], [0], [0], [1], [0, 0, 1, 1], [], []>} : vector<16x128xf32>, vector<128x64xf32>, vector<16x64xf32> -> vector<16x64xf32>
    %34 = arith.addf %28, %33 : vector<16x64xf32>
    %c0_41 = arith.constant 0 : index
    %c2 = arith.constant 2 : index
    %c0_42 = arith.constant 0 : index
    %35 = vector.load %arg14[%c0_41, %c2, %c0_42] : memref<2x10x128xf32, #tpu.memory_space<vmem>>, vector<2x8x128xf32>
    %36 = vector.shape_cast %35 : vector<2x8x128xf32> to vector<16x128xf32>
    %c2_43 = arith.constant 2 : index
    %c0_44 = arith.constant 0 : index
    %c0_45 = arith.constant 0 : index
    %37 = vector.load %arg2[%c2_43, %c0_44, %c0_45] : memref<3x128x64xf32, #tpu.memory_space<vmem>>, vector<1x128x64xf32>
    %38 = vector.shape_cast %37 : vector<1x128x64xf32> to vector<128x64xf32>
    %cst_46 = arith.constant dense<0.000000e+00> : vector<16x64xf32>
    %39 = tpu.matmul %36, %38, %cst_46 {dimension_numbers = #tpu.dot_dimension_numbers<[1], [0], [0], [1], [0, 0, 1, 1], [], []>} : vector<16x128xf32>, vector<128x64xf32>, vector<16x64xf32> -> vector<16x64xf32>
    %40 = arith.addf %34, %39 : vector<16x64xf32>
    %c0_47 = arith.constant 0 : index
    %c0_48 = arith.constant 0 : index
    %41 = vector.load %arg3[%c0_47, %c0_48] : memref<1x64xf32, #tpu.memory_space<vmem>>, vector<1x64xf32>
    %42 = vector.broadcast %41 : vector<1x64xf32> to vector<16x64xf32>
    %43 = arith.addf %40, %42 : vector<16x64xf32>
    %cst_49 = arith.constant 0.000000e+00 : f32
    %44 = vector.broadcast %cst_49 : f32 to vector<16x64xf32>
    %45 = arith.maximumf %43, %44 : vector<16x64xf32>
    %c0_50 = arith.constant 0 : index
    %c0_51 = arith.constant 0 : index
    %46 = vector.load %arg4[%c0_50, %c0_51] : memref<32x16xf32, #tpu.memory_space<vmem>>, vector<32x16xf32>
    %cst_52 = arith.constant dense<0.000000e+00> : vector<32x64xf32>
    %47 = tpu.matmul %46, %45, %cst_52 {dimension_numbers = #tpu.dot_dimension_numbers<[1], [0], [0], [1], [0, 0, 1, 1], [], []>} : vector<32x16xf32>, vector<16x64xf32>, vector<32x64xf32> -> vector<32x64xf32>
    %c0_53 = arith.constant 0 : index
    %c0_54 = arith.constant 0 : index
    %48 = vector.load %arg5[%c0_53, %c0_54] : memref<64x128xf32, #tpu.memory_space<vmem>>, vector<64x128xf32>
    %cst_55 = arith.constant dense<0.000000e+00> : vector<32x128xf32>
    %49 = tpu.matmul %47, %48, %cst_55 {dimension_numbers = #tpu.dot_dimension_numbers<[1], [0], [0], [1], [0, 0, 1, 1], [], []>} : vector<32x64xf32>, vector<64x128xf32>, vector<32x128xf32> -> vector<32x128xf32>
    %cst_56 = arith.constant 0.000000e+00 : f32
    %50 = vector.broadcast %cst_56 : f32 to vector<2x1x128xf32>
    %c0_57 = arith.constant 0 : index
    %c0_58 = arith.constant 0 : index
    %c0_59 = arith.constant 0 : index
    %51 = vector.load %arg15[%c0_57, %c0_58, %c0_59] : memref<2x18x128xf32, #tpu.memory_space<vmem>>, vector<2x1x128xf32>
    tpu.vector_store %arg15[%c0_57, %c0_58, %c0_59], %50 {strides = array<i32>} : memref<2x18x128xf32, #tpu.memory_space<vmem>>, vector<2x1x128xf32>,
    %c0_60 = arith.constant 0 : index
    %c17 = arith.constant 17 : index
    %c0_61 = arith.constant 0 : index
    %52 = vector.load %arg15[%c0_60, %c17, %c0_61] : memref<2x18x128xf32, #tpu.memory_space<vmem>>, vector<2x1x128xf32>
    tpu.vector_store %arg15[%c0_60, %c17, %c0_61], %50 {strides = array<i32>} : memref<2x18x128xf32, #tpu.memory_space<vmem>>, vector<2x1x128xf32>,
    %53 = vector.shape_cast %49 : vector<32x128xf32> to vector<2x16x128xf32>
    %c0_62 = arith.constant 0 : index
    %c1_63 = arith.constant 1 : index
    %c0_64 = arith.constant 0 : index
    %54 = vector.load %arg15[%c0_62, %c1_63, %c0_64] : memref<2x18x128xf32, #tpu.memory_space<vmem>>, vector<2x16x128xf32>
    tpu.vector_store %arg15[%c0_62, %c1_63, %c0_64], %53 {strides = array<i32>} : memref<2x18x128xf32, #tpu.memory_space<vmem>>, vector<2x16x128xf32>,
    %c0_65 = arith.constant 0 : index
    %c0_66 = arith.constant 0 : index
    %c0_67 = arith.constant 0 : index
    %55 = vector.load %arg15[%c0_65, %c0_66, %c0_67] : memref<2x18x128xf32, #tpu.memory_space<vmem>>, vector<2x16x128xf32>
    %56 = vector.shape_cast %55 : vector<2x16x128xf32> to vector<32x128xf32>
    %c0_68 = arith.constant 0 : index
    %c0_69 = arith.constant 0 : index
    %c0_70 = arith.constant 0 : index
    %57 = vector.load %arg6[%c0_68, %c0_69, %c0_70] : memref<3x128x64xf32, #tpu.memory_space<vmem>>, vector<1x128x64xf32>
    %58 = vector.shape_cast %57 : vector<1x128x64xf32> to vector<128x64xf32>
    %cst_71 = arith.constant dense<0.000000e+00> : vector<32x64xf32>
    %59 = tpu.matmul %56, %58, %cst_71 {dimension_numbers = #tpu.dot_dimension_numbers<[1], [0], [0], [1], [0, 0, 1, 1], [], []>} : vector<32x128xf32>, vector<128x64xf32>, vector<32x64xf32> -> vector<32x64xf32>
    %c0_72 = arith.constant 0 : index
    %c1_73 = arith.constant 1 : index
    %c0_74 = arith.constant 0 : index
    %60 = vector.load %arg15[%c0_72, %c1_73, %c0_74] : memref<2x18x128xf32, #tpu.memory_space<vmem>>, vector<2x16x128xf32>
    %61 = vector.shape_cast %60 : vector<2x16x128xf32> to vector<32x128xf32>
    %c1_75 = arith.constant 1 : index
    %c0_76 = arith.constant 0 : index
    %c0_77 = arith.constant 0 : index
    %62 = vector.load %arg6[%c1_75, %c0_76, %c0_77] : memref<3x128x64xf32, #tpu.memory_space<vmem>>, vector<1x128x64xf32>
    %63 = vector.shape_cast %62 : vector<1x128x64xf32> to vector<128x64xf32>
    %cst_78 = arith.constant dense<0.000000e+00> : vector<32x64xf32>
    %64 = tpu.matmul %61, %63, %cst_78 {dimension_numbers = #tpu.dot_dimension_numbers<[1], [0], [0], [1], [0, 0, 1, 1], [], []>} : vector<32x128xf32>, vector<128x64xf32>, vector<32x64xf32> -> vector<32x64xf32>
    %65 = arith.addf %59, %64 : vector<32x64xf32>
    %c0_79 = arith.constant 0 : index
    %c2_80 = arith.constant 2 : index
    %c0_81 = arith.constant 0 : index
    %66 = vector.load %arg15[%c0_79, %c2_80, %c0_81] : memref<2x18x128xf32, #tpu.memory_space<vmem>>, vector<2x16x128xf32>
    %67 = vector.shape_cast %66 : vector<2x16x128xf32> to vector<32x128xf32>
    %c2_82 = arith.constant 2 : index
    %c0_83 = arith.constant 0 : index
    %c0_84 = arith.constant 0 : index
    %68 = vector.load %arg6[%c2_82, %c0_83, %c0_84] : memref<3x128x64xf32, #tpu.memory_space<vmem>>, vector<1x128x64xf32>
    %69 = vector.shape_cast %68 : vector<1x128x64xf32> to vector<128x64xf32>
    %cst_85 = arith.constant dense<0.000000e+00> : vector<32x64xf32>
    %70 = tpu.matmul %67, %69, %cst_85 {dimension_numbers = #tpu.dot_dimension_numbers<[1], [0], [0], [1], [0, 0, 1, 1], [], []>} : vector<32x128xf32>, vector<128x64xf32>, vector<32x64xf32> -> vector<32x64xf32>
    %71 = arith.addf %65, %70 : vector<32x64xf32>
    %c0_86 = arith.constant 0 : index
    %c0_87 = arith.constant 0 : index
    %72 = vector.load %arg7[%c0_86, %c0_87] : memref<1x64xf32, #tpu.memory_space<vmem>>, vector<1x64xf32>
    %73 = vector.broadcast %72 : vector<1x64xf32> to vector<32x64xf32>
    %74 = arith.addf %71, %73 : vector<32x64xf32>
    %c0_88 = arith.constant 0 : index
    %c0_89 = arith.constant 0 : index
    %75 = vector.load %arg9[%c0_88, %c0_89] : memref<32x32xf32, #tpu.memory_space<vmem>>, vector<32x32xf32>
    %c0_90 = arith.constant 0 : index
    %c0_91 = arith.constant 0 : index
    %76 = vector.load %arg8[%c0_90, %c0_91] : memref<64x64xf32, #tpu.memory_space<vmem>>, vector<64x64xf32>
    %cst_92 = arith.constant dense<0.000000e+00> : vector<32x64xf32>
    %77 = tpu.matmul %74, %76, %cst_92 {dimension_numbers = #tpu.dot_dimension_numbers<[1], [0], [0], [1], [0, 0, 1, 1], [], []>} : vector<32x64xf32>, vector<64x64xf32>, vector<32x64xf32> -> vector<32x64xf32>
    %cst_93 = arith.constant dense<0.000000e+00> : vector<32x64xf32>
    %78 = tpu.matmul %75, %77, %cst_93 {dimension_numbers = #tpu.dot_dimension_numbers<[1], [0], [0], [1], [0, 0, 1, 1], [], []>} : vector<32x32xf32>, vector<32x64xf32>, vector<32x64xf32> -> vector<32x64xf32>
    %79 = arith.subf %74, %78 : vector<32x64xf32>
    %c0_94 = arith.constant 0 : index
    %c0_95 = arith.constant 0 : index
    %80 = vector.load %arg9[%c0_94, %c0_95] : memref<32x32xf32, #tpu.memory_space<vmem>>, vector<32x32xf32>
    %81 = arith.mulf %79, %79 : vector<32x64xf32>
    %c0_96 = arith.constant 0 : index
    %c0_97 = arith.constant 0 : index
    %82 = vector.load %arg8[%c0_96, %c0_97] : memref<64x64xf32, #tpu.memory_space<vmem>>, vector<64x64xf32>
    %cst_98 = arith.constant dense<0.000000e+00> : vector<32x64xf32>
    %83 = tpu.matmul %81, %82, %cst_98 {dimension_numbers = #tpu.dot_dimension_numbers<[1], [0], [0], [1], [0, 0, 1, 1], [], []>} : vector<32x64xf32>, vector<64x64xf32>, vector<32x64xf32> -> vector<32x64xf32>
    %cst_99 = arith.constant dense<0.000000e+00> : vector<32x64xf32>
    %84 = tpu.matmul %80, %83, %cst_99 {dimension_numbers = #tpu.dot_dimension_numbers<[1], [0], [0], [1], [0, 0, 1, 1], [], []>} : vector<32x32xf32>, vector<32x64xf32>, vector<32x64xf32> -> vector<32x64xf32>
    %cst_100 = arith.constant 9.99999974E-6 : f32
    %85 = vector.broadcast %cst_100 : f32 to vector<32x64xf32>
    %86 = arith.addf %84, %85 : vector<32x64xf32>
    %87 = math.rsqrt %86 : vector<32x64xf32>
    %88 = arith.mulf %79, %87 : vector<32x64xf32>
    %c0_101 = arith.constant 0 : index
    %c0_102 = arith.constant 0 : index
    %89 = vector.load %arg12[%c0_101, %c0_102] : memref<64x128xf32, #tpu.memory_space<vmem>>, vector<64x128xf32>
    %cst_103 = arith.constant dense<0.000000e+00> : vector<32x128xf32>
    %90 = tpu.matmul %88, %89, %cst_103 {dimension_numbers = #tpu.dot_dimension_numbers<[1], [0], [0], [1], [0, 0, 1, 1], [], []>} : vector<32x64xf32>, vector<64x128xf32>, vector<32x128xf32> -> vector<32x128xf32>
    %91 = arith.addf %14, %90 : vector<32x128xf32>
    %92 = vector.shape_cast %91 : vector<32x128xf32> to vector<2x16x128xf32>
    %c0_104 = arith.constant 0 : index
    %c0_105 = arith.constant 0 : index
    %c0_106 = arith.constant 0 : index
    %93 = vector.load %arg13[%c0_104, %c0_105, %c0_106] : memref<2x16x128xf32, #tpu.memory_space<vmem>>, vector<2x16x128xf32>
    tpu.vector_store %arg13[%c0_104, %c0_105, %c0_106], %92 {strides = array<i32>} : memref<2x16x128xf32, #tpu.memory_space<vmem>>, vector<2x16x128xf32>,
    return
  }
  func.func @transform_0(%arg0: i32) -> (i32, i32, i32) {
    %c0_i32 = arith.constant 0 : i32
    %c0_i32_0 = arith.constant 0 : i32
    %c0_i32_1 = arith.constant 0 : i32
    return %arg0, %c0_i32, %c0_i32_0 : i32, i32, i32
  }
  func.func @transform_1(%arg0: i32) -> (i32, i32, i32) {
    %c0_i32 = arith.constant 0 : i32
    %c0_i32_0 = arith.constant 0 : i32
    %c0_i32_1 = arith.constant 0 : i32
    %c0_i32_2 = arith.constant 0 : i32
    return %c0_i32, %c0_i32_0, %c0_i32_1 : i32, i32, i32
  }
  func.func @transform_2(%arg0: i32) -> (i32, i32) {
    %c0_i32 = arith.constant 0 : i32
    %c0_i32_0 = arith.constant 0 : i32
    %c0_i32_1 = arith.constant 0 : i32
    return %c0_i32, %c0_i32_0 : i32, i32
  }
  func.func @transform_3(%arg0: i32) -> (i32, i32) {
    %c0_i32 = arith.constant 0 : i32
    %c0_i32_0 = arith.constant 0 : i32
    %c0_i32_1 = arith.constant 0 : i32
    return %c0_i32, %c0_i32_0 : i32, i32
  }
  func.func @transform_4(%arg0: i32) -> (i32, i32) {
    %c0_i32 = arith.constant 0 : i32
    %c0_i32_0 = arith.constant 0 : i32
    %c0_i32_1 = arith.constant 0 : i32
    return %c0_i32, %c0_i32_0 : i32, i32
  }
  func.func @transform_5(%arg0: i32) -> (i32, i32, i32) {
    %c0_i32 = arith.constant 0 : i32
    %c0_i32_0 = arith.constant 0 : i32
    %c0_i32_1 = arith.constant 0 : i32
    %c0_i32_2 = arith.constant 0 : i32
    return %c0_i32, %c0_i32_0, %c0_i32_1 : i32, i32, i32
  }
  func.func @transform_6(%arg0: i32) -> (i32, i32) {
    %c0_i32 = arith.constant 0 : i32
    %c0_i32_0 = arith.constant 0 : i32
    %c0_i32_1 = arith.constant 0 : i32
    return %c0_i32, %c0_i32_0 : i32, i32
  }
  func.func @transform_7(%arg0: i32) -> (i32, i32) {
    %c0_i32 = arith.constant 0 : i32
    %c0_i32_0 = arith.constant 0 : i32
    %c0_i32_1 = arith.constant 0 : i32
    return %c0_i32, %c0_i32_0 : i32, i32
  }
  func.func @transform_8(%arg0: i32) -> (i32, i32) {
    %c0_i32 = arith.constant 0 : i32
    %c0_i32_0 = arith.constant 0 : i32
    %c0_i32_1 = arith.constant 0 : i32
    return %c0_i32, %c0_i32_0 : i32, i32
  }
  func.func @transform_9(%arg0: i32) -> (i32, i32, i32) {
    %c0_i32 = arith.constant 0 : i32
    %c0_i32_0 = arith.constant 0 : i32
    %c0_i32_1 = arith.constant 0 : i32
    %c0_i32_2 = arith.constant 0 : i32
    return %c0_i32, %c0_i32_0, %c0_i32_1 : i32, i32, i32
  }
  func.func @transform_10(%arg0: i32) -> (i32, i32, i32) {
    %c0_i32 = arith.constant 0 : i32
    %c0_i32_0 = arith.constant 0 : i32
    %c0_i32_1 = arith.constant 0 : i32
    %c0_i32_2 = arith.constant 0 : i32
    return %c0_i32, %c0_i32_0, %c0_i32_1 : i32, i32, i32
  }
  func.func @transform_11(%arg0: i32) -> (i32, i32) {
    %c0_i32 = arith.constant 0 : i32
    %c0_i32_0 = arith.constant 0 : i32
    %c0_i32_1 = arith.constant 0 : i32
    return %c0_i32, %c0_i32_0 : i32, i32
  }
  func.func @transform_12(%arg0: i32) -> (i32, i32, i32) {
    %c0_i32 = arith.constant 0 : i32
    %c0_i32_0 = arith.constant 0 : i32
    %c0_i32_1 = arith.constant 0 : i32
    return %arg0, %c0_i32, %c0_i32_0 : i32, i32, i32
  }
}

</mosaic_0001>

<bundles_post_ra>
// kernel: tile.18
= control target key start
LH: loop header
LB: loop body
LE: loop exit
PB: predicated region body
PF: predicated region fallthrough
CT: control target
= control target key end

     0   :  { %s28_s0 = inlined_call_operand.vmem [shape: f32[4], index: 0, kind: input, shape index: {}]   ;;  %s29_s1 = inlined_call_operand.vmem [shape: f32[16,4], index: 1, kind: output, shape index: {}]  }
   0x1   :  { %v4_v0 = vld [vmem:[%s28_s0] ss:$0 sm:$0xff] }
   0x2   :  { %5 = vst [vmem:[%s29_s1] sm:$0xff] %v4_v0  ;;  %8 = vst [vmem:[%s29_s1 + $0x8] sm:$0xff] %v4_v0 }

// kernel: tile.19
= control target key start
LH: loop header
LB: loop body
LE: loop exit
PB: predicated region body
PF: predicated region fallthrough
CT: control target
= control target key end

     0   :  { %s131_s10 = smov 60   ;;  %s132_s11 = smov 52   ;;  %vm3_vm0 = vcmask 31744   ;;  %vm9_vm1 = vcmask 523744   ;;  %vm15_vm2 = vcmask 490944   ;;  %vm21_vm3 = vcmask 458144   ;;  %s207_s0 = inlined_call_operand.vmem [shape: f32[16,4], index: 0, kind: input, shape index: {}]   ;;  %s208_s1 = inlined_call_operand.vmem [shape: f32[1,64], index: 1, kind: output, shape index: {}]  }
   0x1   :  { %v101_v0 = vld [vmem:[%s207_s0 + $0xf] sm:$0x1]   ;;  %v103_v1 = vld [vmem:[%s207_s0 + $0xd] sm:$0x1]   ;;  %v102_v2 = vld [vmem:[%s207_s0 + $0xe] sm:$0x1]  }
   0x2   :  { %7 = vrot.lane.b32.xlu0 %v101_v0, %s131_s10  ;;  %19 = vrot.lane.b32.xlu1 %v103_v1, %s132_s11  ;;  %v104_v3 = vld [vmem:[%s207_s0 + $0xc] sm:$0x1]   ;;  %s133_s16 = smov 56   ;;  %s134_s17 = smov 48   ;;  %v105_v4 = vld [vmem:[%s207_s0 + $0xb] sm:$0x1]  }
   0x3   :  { %v106_v5 = vld [vmem:[%s207_s0 + $0xa] sm:$0x1]   ;;  %v2_v6 = vld [vmem:[%s207_s0] sm:$0x1]   ;;  %s135_s24 = smov 44   ;;  %s136_s25 = smov 40  }
   0x4   :  { %4 = vst.msk [vmem:[#allocation0] sm:$0x1] %vm3_vm0, %v2_v6   ;;  %v107_v7 = vld [vmem:[%s207_s0 + $0x9] sm:$0x1]   ;;  %v108_v8 = vld [vmem:[%s207_s0 + $0x8] sm:$0x1]  }
   0x5   :  { %s137_s30 = smov 36   ;;  %s138_s2 = smov 32   ;;  %v109_v9 = vld [vmem:[%s207_s0 + $0x7] sm:$0x1]   ;;  %v110_v10 = vld [vmem:[%s207_s0 + $0x6] sm:$0x1]  }
   0x6   :  { %13 = vrot.lane.b32.xlu0 %v102_v2, %s133_s16  ;;  %25 = vrot.lane.b32.xlu1 %v104_v3, %s134_s17  ;;  %s139_s7 = smov 28   ;;  %s140_s8 = smov 24   ;;  %v111_v11 = vld [vmem:[%s207_s0 + $0x5] sm:$0x1]   ;;  %v112_v12 = vld [vmem:[%s207_s0 + $0x4] sm:$0x1]  }
   0x7   :  { %s141_s13 = smov 20   ;;  %s142_s14 = smov 16   ;;  %v113_v13 = vld [vmem:[%s207_s0 + $0x3] sm:$0x1]   ;;  %v114_v14 = vld [vmem:[%s207_s0 + $0x2] sm:$0x1]  }
   0x8   :  { %s143_s19 = smov 12   ;;  %s144_s20 = smov 8   ;;  %v115_v15 = vld [vmem:[%s207_s0 + $0x1] sm:$0x1]   ;;  %vm27_vm4 = vcmask 425344   ;;  %vm33_vm5 = vcmask 392544  }
   0x9   :  { %s145_s0 = smov 4   ;;  %vm39_vm6 = vcmask 359744   ;;  %vm45_vm7 = vcmask 326944   ;;  %vm51_vm8 = vcmask 294144   ;;  %vm57_vm9 = vcmask 261344  }
   0xa   :  { %31 = vrot.lane.b32.xlu0 %v105_v4, %s135_s24  ;;  %37 = vrot.lane.b32.xlu1 %v106_v5, %s136_s25  ;;  %vm63_vm10 = vcmask 228544   ;;  %vm69_vm11 = vcmask 195744   ;;  %vm75_vm12 = vcmask 162944   ;;  %vm81_vm13 = vcmask 130144  }
   0xb   :  { %vm87_vm14 = vcmask 97344   ;;  %vm93_vm15 = vcmask 64544  }
   0xe   :  { %43 = vrot.lane.b32.xlu0 %v107_v7, %s137_s30  ;;  %49 = vrot.lane.b32.xlu1 %v108_v8, %s138_s2 }
  0x12   :  { %55 = vrot.lane.b32.xlu0 %v109_v9, %s139_s7  ;;  %61 = vrot.lane.b32.xlu1 %v110_v10, %s140_s8 }
  0x16   :  { %67 = vrot.lane.b32.xlu0 %v111_v11, %s141_s13  ;;  %73 = vrot.lane.b32.xlu1 %v112_v12, %s142_s14 }
  0x1a   :  { %79 = vrot.lane.b32.xlu0 %v113_v13, %s143_s19  ;;  %85 = vrot.lane.b32.xlu1 %v114_v14, %s144_s20 }
  0x1e   :  { %91 = vrot.lane.b32.xlu0 %v115_v15, %s145_s0 }
  0x74   :  { %v8_v16 = vpop.permute.xlu0 %7   ;;  %v20_v17 = vpop.permute.xlu1 %19  }
  0x75   :  { %10 = vst.msk [vmem:[#allocation0] sm:$0x1] %vm9_vm1, %v8_v16  }
  0x78   :  { %v14_v18 = vpop.permute.xlu0 %13   ;;  %v26_v19 = vpop.permute.xlu1 %25  }
  0x79   :  { %16 = vst.msk [vmem:[#allocation0] sm:$0x1] %vm15_vm2, %v14_v18  }
  0x7a   :  { %22 = vst.msk [vmem:[#allocation0] sm:$0x1] %vm21_vm3, %v20_v17  }
  0x7b   :  { %28 = vst.msk [vmem:[#allocation0] sm:$0x1] %vm27_vm4, %v26_v19  }
  0x7c   :  { %v32_v20 = vpop.permute.xlu0 %31   ;;  %v38_v21 = vpop.permute.xlu1 %37  }
  0x7d   :  { %34 = vst.msk [vmem:[#allocation0] sm:$0x1] %vm33_vm5, %v32_v20  }
  0x7e   :  { %40 = vst.msk [vmem:[#allocation0] sm:$0x1] %vm39_vm6, %v38_v21  }
  0x80   :  { %v44_v22 = vpop.permute.xlu0 %43   ;;  %v50_v23 = vpop.permute.xlu1 %49  }
  0x81   :  { %46 = vst.msk [vmem:[#allocation0] sm:$0x1] %vm45_vm7, %v44_v22  }
  0x82   :  { %52 = vst.msk [vmem:[#allocation0] sm:$0x1] %vm51_vm8, %v50_v23  }
  0x84   :  { %v56_v24 = vpop.permute.xlu0 %55   ;;  %v62_v25 = vpop.permute.xlu1 %61  }
  0x85   :  { %58 = vst.msk [vmem:[#allocation0] sm:$0x1] %vm57_vm9, %v56_v24  }
  0x86   :  { %64 = vst.msk [vmem:[#allocation0] sm:$0x1] %vm63_vm10, %v62_v25  }
  0x88   :  { %v68_v26 = vpop.permute.xlu0 %67   ;;  %v74_v27 = vpop.permute.xlu1 %73  }
  0x89   :  { %70 = vst.msk [vmem:[#allocation0] sm:$0x1] %vm69_vm11, %v68_v26  }
  0x8a   :  { %76 = vst.msk [vmem:[#allocation0] sm:$0x1] %vm75_vm12, %v74_v27  }
  0x8c   :  { %v80_v28 = vpop.permute.xlu0 %79   ;;  %v86_v29 = vpop.permute.xlu1 %85  }
  0x8d   :  { %82 = vst.msk [vmem:[#allocation0] sm:$0x1] %vm81_vm13, %v80_v28  }
  0x8e   :  { %88 = vst.msk [vmem:[#allocation0] sm:$0x1] %vm87_vm14, %v86_v29  }
  0x90   :  { %v92_v30 = vpop.permute.xlu0 %91  }
  0x91   :  { %94 = vst.msk [vmem:[#allocation0] sm:$0x1] %vm93_vm15, %v92_v30  }
  0x98   :  { %v98_v31 = vld [vmem:[#allocation0] sm:$0x1] }
  0x99   :  { %100 = vst [vmem:[%s208_s1] sm:$0x1] %v98_v31 }

// kernel: tile.13
= control target key start
LH: loop header
LB: loop body
LE: loop exit
PB: predicated region body
PF: predicated region fallthrough
CT: control target
= control target key end

     0   :  { %s22_s0 = inlined_call_operand.vmem [shape: f32[8], index: 0, kind: input, shape index: {}]   ;;  %s23_s1 = inlined_call_operand.vmem [shape: f32[8,8], index: 1, kind: output, shape index: {}]  }
   0x1   :  { %v4_v0 = vld [vmem:[%s22_s0] ss:$0 sm:$0xff] }
   0x2   :  { %5 = vst [vmem:[%s23_s1] sm:$0xff] %v4_v0 }

// kernel: tile.14
= control target key start
LH: loop header
LB: loop body
LE: loop exit
PB: predicated region body
PF: predicated region fallthrough
CT: control target
= control target key end

     0   :  { %s67_s10 = smov 56   ;;  %s68_s11 = smov 40   ;;  %vm3_vm0 = vcmask 64512   ;;  %vm9_vm1 = vcmask 523712   ;;  %vm15_vm2 = vcmask 458112   ;;  %vm21_vm3 = vcmask 392512   ;;  %s111_s0 = inlined_call_operand.vmem [shape: f32[8,8], index: 0, kind: input, shape index: {}]   ;;  %s112_s1 = inlined_call_operand.vmem [shape: f32[1,64], index: 1, kind: output, shape index: {}]  }
   0x1   :  { %v53_v0 = vld [vmem:[%s111_s0 + $0x7] sm:$0x1]   ;;  %v55_v1 = vld [vmem:[%s111_s0 + $0x5] sm:$0x1]   ;;  %v54_v2 = vld [vmem:[%s111_s0 + $0x6] sm:$0x1]  }
   0x2   :  { %7 = vrot.lane.b32.xlu0 %v53_v0, %s67_s10  ;;  %19 = vrot.lane.b32.xlu1 %v55_v1, %s68_s11  ;;  %v56_v3 = vld [vmem:[%s111_s0 + $0x4] sm:$0x1]   ;;  %v2_v4 = vld [vmem:[%s111_s0] sm:$0x1]   ;;  %s69_s18 = smov 48   ;;  %s70_s19 = smov 32  }
   0x3   :  { %4 = vst.msk [vmem:[#allocation0] sm:$0x1] %vm3_vm0, %v2_v4   ;;  %v57_v5 = vld [vmem:[%s111_s0 + $0x3] sm:$0x1]   ;;  %v58_v6 = vld [vmem:[%s111_s0 + $0x2] sm:$0x1]  }
   0x4   :  { %s71_s24 = smov 24   ;;  %s72_s25 = smov 16   ;;  %v59_v7 = vld [vmem:[%s111_s0 + $0x1] sm:$0x1]   ;;  %vm27_vm4 = vcmask 326912   ;;  %vm33_vm5 = vcmask 261312  }
   0x5   :  { %s73_s0 = smov 8   ;;  %vm39_vm6 = vcmask 195712   ;;  %vm45_vm7 = vcmask 130112  }
   0x6   :  { %13 = vrot.lane.b32.xlu0 %v54_v2, %s69_s18  ;;  %25 = vrot.lane.b32.xlu1 %v56_v3, %s70_s19 }
   0xa   :  { %31 = vrot.lane.b32.xlu0 %v57_v5, %s71_s24  ;;  %37 = vrot.lane.b32.xlu1 %v58_v6, %s72_s25 }
   0xe   :  { %43 = vrot.lane.b32.xlu0 %v59_v7, %s73_s0 }
  0x74   :  { %v8_v8 = vpop.permute.xlu0 %7   ;;  %v20_v9 = vpop.permute.xlu1 %19  }
  0x75   :  { %10 = vst.msk [vmem:[#allocation0] sm:$0x1] %vm9_vm1, %v8_v8  }
  0x78   :  { %v14_v10 = vpop.permute.xlu0 %13   ;;  %v26_v11 = vpop.permute.xlu1 %25  }
  0x79   :  { %16 = vst.msk [vmem:[#allocation0] sm:$0x1] %vm15_vm2, %v14_v10  }
  0x7a   :  { %22 = vst.msk [vmem:[#allocation0] sm:$0x1] %vm21_vm3, %v20_v9  }
  0x7b   :  { %28 = vst.msk [vmem:[#allocation0] sm:$0x1] %vm27_vm4, %v26_v11  }
  0x7c   :  { %v32_v12 = vpop.permute.xlu0 %31   ;;  %v38_v13 = vpop.permute.xlu1 %37  }
  0x7d   :  { %34 = vst.msk [vmem:[#allocation0] sm:$0x1] %vm33_vm5, %v32_v12  }
  0x7e   :  { %40 = vst.msk [vmem:[#allocation0] sm:$0x1] %vm39_vm6, %v38_v13  }
  0x80   :  { %v44_v14 = vpop.permute.xlu0 %43  }
  0x81   :  { %46 = vst.msk [vmem:[#allocation0] sm:$0x1] %vm45_vm7, %v44_v14  }
  0x88   :  { %v50_v15 = vld [vmem:[#allocation0] sm:$0x1] }
  0x89   :  { %52 = vst [vmem:[%s112_s1] sm:$0x1] %v50_v15 }

// kernel: unet_innermost_block_forward.1
= control target key start
LH: loop header
LB: loop body
LE: loop exit
PB: predicated region body
PF: predicated region fallthrough
CT: control target
= control target key end

     0   :  { %s3498_s21 = smov 0   ;;  %s4120_s0 = inlined_call_operand.vmem [shape: f32[4,8,128], index: 0, kind: input, shape index: {}]   ;;  %s4121_s1 = inlined_call_operand.vmem [shape: f32[3,128,64], index: 1, kind: input, shape index: {}]   ;;  %s4122_s2 = inlined_call_operand.vmem [shape: f32[1,64], index: 2, kind: input, shape index: {}]   ;;  %s4123_s3 = inlined_call_operand.vmem [shape: f32[32,16], index: 3, kind: input, shape index: {}]   ;;  %s4124_s4 = inlined_call_operand.vmem [shape: f32[64,128], index: 4, kind: input, shape index: {}]   ;;  %s4125_s5 = inlined_call_operand.vmem [shape: f32[3,128,64], index: 5, kind: input, shape index: {}]   ;;  %s4126_s6 = inlined_call_operand.vmem [shape: f32[1,64], index: 6, kind: input, shape index: {}]   ;;  %s4127_s7 = inlined_call_operand.vmem [shape: f32[64,64], index: 7, kind: input, shape index: {}]   ;;  %s4128_s8 = inlined_call_operand.vmem [shape: f32[32,32], index: 8, kind: input, shape index: {}]   ;;  %s4129_s9 = inlined_call_operand.vmem [shape: f32[2,32,16], index: 9, kind: input, shape index: {}]   ;;  %s4130_s10 = inlined_call_operand.vmem [shape: f32[2,128,128], index: 10, kind: input, shape index: {}]   ;;  %s4131_s11 = inlined_call_operand.vmem [shape: f32[64,128], index: 11, kind: input, shape index: {}]   ;;  %s4132_s12 = inlined_call_operand.vmem [shape: f32[4,16,128], index: 12, kind: output, shape index: {}]  }
   0x1 LB: > { %s2237_s22 = sadd.s32 4294967295, %s3430_s21   ;;  %p2241_p0 = scmp.ge.s32.totalorder %s3430_s21, 1  ;;  %s3430_s21 = sphi %s3498_s21, %s22_s21  }
   0x2   : > { %p363_p1 = scmp.lt.s32.totalorder %s3430_s21, 3 }
   0x4   : > { %p364_p2 = pnand %p2241_p0, %p363_p1 }
   0x5   : > { %v2251_v0 = vld [vmem:[%s4130_s10 + $0x80] sm:$0xff] (!%p364_p2)  ;;  %v2252_v1 = vld [vmem:[%s4130_s10 + $0x88] sm:$0xff] (!%p364_p2)  ;;  %v2253_v2 = vld [vmem:[%s4130_s10 + $0x90] sm:$0xff] (!%p364_p2)  ;;  %s2242_s29 = sshll.u32 (!%p364_p2), %s2237_s22, 1  ;;  %vm613_vm2 = vcmask (!%p364_p2), 130048   ;;  %v3432_v31 = vmov (!%p364_p2), 0.0  }
   0x6   : > { %367 = sbr.rel (%p364_p2) target bundleno = 2400 (0x960), region = 68  ;;  %v3071_v3 = vpack.c.bf16 (!%p364_p2), %v2252_v1, %v2251_v0  ;;  %v2254_v4 = vld [vmem:[%s4130_s10 + $0x98] sm:$0xff] (!%p364_p2)  ;;  %p407_p3 = scmp.lt.s32.totalorder (!%p364_p2), %s2242_s29, 3  ;;  %v2255_v6 = vld [vmem:[%s4130_s10 + $0xa0] sm:$0xff] (!%p364_p2)  ;;  %v2256_v7 = vld [vmem:[%s4130_s10 + $0xa8] sm:$0xff] (!%p364_p2)  ;;  %vm1223_vm3 = vcmask (!%p364_p2), 523264  }
   0x7   : > { %v3075_v5 = vpack.c.bf16 (!%p364_p2), %v2254_v4, %v2253_v2  ;;  %v3079_v8 = vpack.c.bf16 (!%p364_p2), %v2256_v7, %v2255_v6  ;;  %v2257_v9 = vld [vmem:[%s4130_s10 + $0xb0] sm:$0xff] (!%p364_p2)  ;;  %v2258_v10 = vld [vmem:[%s4130_s10 + $0xb8] sm:$0xff] (!%p364_p2)  ;;  %v2259_v16 = vld [vmem:[%s4130_s10 + $0xc0] sm:$0xff] (!%p364_p2)  ;;  %814 = vst [vmem:[#allocation2] sm:$0x1] (!%p364_p2), %v3432_v31  ;;  %vm1770_vm4 = vcmask (!%p364_p2), 261120  }
   0x8   : > { %3072 = vmatprep.subr.bf16.mxu1 (!%p364_p2), %v3071_v3  ;;  %v3083_v15 = vpack.c.bf16 (!%p364_p2), %v2258_v10, %v2257_v9  ;;  %v2260_v17 = vld [vmem:[%s4130_s10 + $0xc8] sm:$0xff] (!%p364_p2)  ;;  %v2261_v21 = vld [vmem:[%s4130_s10 + $0xd0] sm:$0xff] (!%p364_p2)  ;;  %v2262_v22 = vld [vmem:[%s4130_s10 + $0xd8] sm:$0xff] (!%p364_p2)  ;;  %815 = vst [vmem:[#allocation2 + $0x10] sm:$0x1] (!%p364_p2), %v3432_v31 }
   0x9   : > { %3074 = vmatpush3.bf16.msra.mxu1 (!%p364_p2), %v3071_v3  ;;  %v3087_v20 = vpack.c.bf16 (!%p364_p2), %v2260_v17, %v2259_v16  ;;  %v3091_v23 = vpack.c.bf16 (!%p364_p2), %v2262_v22, %v2261_v21  ;;  %v2263_v24 = vld [vmem:[%s4130_s10 + $0xe0] sm:$0xff] (!%p364_p2)  ;;  %v2264_v25 = vld [vmem:[%s4130_s10 + $0xe8] sm:$0xff] (!%p364_p2)  ;;  %v2265_v27 = vld [vmem:[%s4130_s10 + $0xf0] sm:$0xff] (!%p364_p2)  ;;  %816 = vst [vmem:[#allocation2 + $0x9] sm:$0x1] (!%p364_p2), %v3432_v31 }
   0xa   : > { %3076 = vmatprep.subr.bf16.mxu1 (!%p364_p2), %v3075_v5  ;;  %v3095_v26 = vpack.c.bf16 (!%p364_p2), %v2264_v25, %v2263_v24  ;;  %v2266_v28 = vld [vmem:[%s4130_s10 + $0xf8] sm:$0xff] (!%p364_p2)  ;;  %v2247_v30 = vld [vmem:[%s4129_s9 + $0x20] sm:$0xff] (!%p364_p2)  ;;  %817 = vst [vmem:[#allocation2 + $0x19] sm:$0x1] (!%p364_p2), %v3432_v31  ;;  %1321 = vst [vmem:[#allocation3] sm:$0x1] (!%p364_p2), %v3432_v31 }
   0xb   : > { %v3099_v29 = vpack.c.bf16 (!%p364_p2), %v2266_v28, %v2265_v27  ;;  %1322 = vst [vmem:[#allocation3 + $0x18] sm:$0x1] (!%p364_p2), %v3432_v31  ;;  %1323 = vst [vmem:[#allocation3 + $0x11] sm:$0x1] (!%p364_p2), %v3432_v31  ;;  %v2275_v32 = vld [vmem:[%s4121_s1 + $0x80] sm:$0xff] (!%p364_p2)  ;;  %v2276_v33 = vld [vmem:[%s4121_s1 + $0x88] sm:$0xff] (!%p364_p2) }
   0xc   : > { %1324 = vst [vmem:[#allocation3 + $0x29] sm:$0x1] (!%p364_p2), %v3432_v31  ;;  %v3111_v37 = vpack.c.bf16 (!%p364_p2), %v2276_v33, %v2275_v32  ;;  %v2277_v38 = vld [vmem:[%s4121_s1 + $0x90] sm:$0xff] (!%p364_p2)  ;;  %v2278_v39 = vld [vmem:[%s4121_s1 + $0x98] sm:$0xff] (!%p364_p2)  ;;  %v2248_v40 = vld [vmem:[%s4129_s9 + $0x28] sm:$0xff] (!%p364_p2) }
   0xd   : > { %s4134_s29 = smov (!%p407_p3, %s2242_s29), 3  ;;  %3078 = vmatpush3.bf16.msra.mxu1 %v3075_v5  ;;  %v3115_v41 = vpack.c.bf16 %v2278_v39, %v2277_v38  ;;  %v2249_v42 = vld [vmem:[%s4129_s9 + $0x30] sm:$0xff]  ;;  %v2279_v43 = vld [vmem:[%s4121_s1 + $0xa0] sm:$0xff]  ;;  %v2280_v44 = vld [vmem:[%s4121_s1 + $0xa8] sm:$0xff] }
   0xe   : > { %s2243_s18 = sshll.u32 %s4134_s29, 3  ;;  %3080 = vmatprep.subr.bf16.mxu1 %v3079_v8  ;;  %v2250_v45 = vld [vmem:[%s4129_s9 + $0x38] sm:$0xff]  ;;  %v3119_v46 = vpack.c.bf16 %v2280_v44, %v2279_v43  ;;  %v2281_v47 = vld [vmem:[%s4121_s1 + $0xb0] sm:$0xff]  ;;  %v2283_v50 = vld [vmem:[%s4121_s1 + $0xc0] sm:$0xff]  ;;  %s2371_s14 = sshll.u32 %s4134_s29, 4 }
   0xf   : > { %s410_s26 = scalar_lea.vmem %s4120_s0, %s2243_s18  ;;  %v2282_v48 = vld [vmem:[%s4121_s1 + $0xb8] sm:$0xff]  ;;  %v2284_v51 = vld [vmem:[%s4121_s1 + $0xc8] sm:$0xff]  ;;  %v2285_v53 = vld [vmem:[%s4121_s1 + $0xd0] sm:$0xff]  ;;  %s417_s17 = scalar_lea.vmem %s4132_s12, %s2371_s14 }
  0x10   : > { %v419_v11 = vld [vmem:[%s410_s26] sm:$0xff]  ;;  %v3536_v12 = vld [vmem:[%s410_s26 + $0x8] sm:$0xff]  ;;  %v3123_v49 = vpack.c.bf16 %v2282_v48, %v2281_v47  ;;  %v3127_v52 = vpack.c.bf16 %v2284_v51, %v2283_v50  ;;  %v2286_v54 = vld [vmem:[%s4121_s1 + $0xd8] sm:$0xff] }
  0x11   : > { %2671 = vmatprep.mubr.f32.mxu1 %v419_v11  ;;  %vm808_vm0 = vcmp.ge.f32.partialorder %v419_v11, 0.0  ;;  %v810_v13 = vmul.f32 0.2, %v419_v11  ;;  %vm809_vm1 = vcmp.ge.f32.partialorder %v3536_v12, 0.0  ;;  %v811_v14 = vmul.f32 0.2, %v3536_v12  ;;  %2636 = vmatprep.mubr.f32.mxu0 %v419_v11 }
  0x12   : > { %3082 = vmatpush3.bf16.msra.mxu1 %v3079_v8  ;;  %v3131_v55 = vpack.c.bf16 %v2286_v54, %v2285_v53  ;;  %v2287_v56 = vld [vmem:[%s4121_s1 + $0xe0] sm:$0xff]  ;;  %v2288_v57 = vld [vmem:[%s4121_s1 + $0xe8] sm:$0xff]  ;;  %v2289_v59 = vld [vmem:[%s4121_s1 + $0xf0] sm:$0xff] }
  0x13   : > { %v3546_v18 = vsel %vm808_vm0, %v419_v11, %v810_v13  ;;  %v3549_v19 = vsel %vm809_vm1, %v3536_v12, %v811_v14  ;;  %3084 = vmatprep.subr.bf16.mxu1 %v3083_v15  ;;  %v3135_v58 = vpack.c.bf16 %v2288_v57, %v2287_v56  ;;  %v2290_v60 = vld [vmem:[%s4121_s1 + $0xf8] sm:$0xff]  ;;  %v822_v62 = vld [vmem:[%s4121_s1] sm:$0xff]  ;;  %v823_v63 = vld [vmem:[%s4121_s1 + $0x8] sm:$0xff] }
  0x14   : > { %818 = vst [vmem:[#allocation2 + $0x1] sm:$0xff] %v3546_v18  ;;  %819 = vst [vmem:[#allocation2 + $0x11] sm:$0xff] %v3549_v19  ;;  %v3139_v61 = vpack.c.bf16 %v2290_v60, %v2289_v59  ;;  %v3143_v0 = vpack.c.bf16 %v823_v63, %v822_v62  ;;  %v824_v1 = vld [vmem:[%s4121_s1 + $0x10] sm:$0xff]  ;;  %v825_v2 = vld [vmem:[%s4121_s1 + $0x18] sm:$0xff] }
  0x15   : > { %v3147_v3 = vpack.c.bf16 %v825_v2, %v824_v1  ;;  %v826_v5 = vld [vmem:[%s4121_s1 + $0x20] sm:$0xff]  ;;  %v827_v6 = vld [vmem:[%s4121_s1 + $0x28] sm:$0xff]  ;;  %v828_v8 = vld [vmem:[%s4121_s1 + $0x30] sm:$0xff] }
  0x16   : > { %3086 = vmatpush3.bf16.msra.mxu1 %v3083_v15  ;;  %v3151_v7 = vpack.c.bf16 %v827_v6, %v826_v5  ;;  %v829_v9 = vld [vmem:[%s4121_s1 + $0x38] sm:$0xff]  ;;  %v830_v11 = vld [vmem:[%s4121_s1 + $0x40] sm:$0xff]  ;;  %v831_v13 = vld [vmem:[%s4121_s1 + $0x48] sm:$0xff] }
  0x17   : > { %3088 = vmatprep.subr.bf16.mxu1 %v3087_v20  ;;  %v3155_v10 = vpack.c.bf16 %v829_v9, %v828_v8  ;;  %v3159_v14 = vpack.c.bf16 %v831_v13, %v830_v11  ;;  %v832_v15 = vld [vmem:[%s4121_s1 + $0x50] sm:$0xff]  ;;  %v833_v16 = vld [vmem:[%s4121_s1 + $0x58] sm:$0xff]  ;;  %v2291_v24 = vld [vmem:[%s4121_s1 + $0x100] sm:$0xff] }
  0x18   : > { %v3163_v17 = vpack.c.bf16 %v833_v16, %v832_v15  ;;  %v836_v21 = vld [vmem:[%s4121_s1 + $0x70] sm:$0xff]  ;;  %v837_v22 = vld [vmem:[%s4121_s1 + $0x78] sm:$0xff]  ;;  %v2292_v25 = vld [vmem:[%s4121_s1 + $0x108] sm:$0xff] }
  0x19   : > { %v2293_v27 = vld [vmem:[%s4121_s1 + $0x110] sm:$0xff]  ;;  %v2294_v28 = vld [vmem:[%s4121_s1 + $0x118] sm:$0xff]  ;;  %v2295_v32 = vld [vmem:[%s4121_s1 + $0x120] sm:$0xff] }
  0x1a   : > { %3090 = vmatpush3.bf16.msra.mxu1 %v3087_v20  ;;  %v2296_v33 = vld [vmem:[%s4121_s1 + $0x128] sm:$0xff]  ;;  %v2299_v38 = vld [vmem:[%s4121_s1 + $0x140] sm:$0xff]  ;;  %v2305_v47 = vld [vmem:[%s4121_s1 + $0x170] sm:$0xff] }
  0x1b   : > { %3092 = vmatprep.subr.bf16.mxu1 %v3091_v23  ;;  %v820_v4 = vld [vmem:[#allocation2] sm:$0xff]  ;;  %v2300_v39 = vld [vmem:[%s4121_s1 + $0x148] sm:$0xff]  ;;  %v2306_v48 = vld [vmem:[%s4121_s1 + $0x178] sm:$0xff] }
  0x1c   : > { %v1007_v31 = vld [vmem:[#allocation2 + $0x2] sm:$0xff]  ;;  %v428_v54 = vld [vmem:[%s4130_s10 + $0x18] sm:$0xff]  ;;  %v431_v60 = vld [vmem:[%s4130_s10 + $0x30] sm:$0xff] }
  0x1d   : > { %v2303_v44 = vld [vmem:[%s4121_s1 + $0x160] sm:$0xff]  ;;  %v426_v51 = vld [vmem:[%s4130_s10 + $0x8] sm:$0xff]  ;;  %v435_v2 = vld [vmem:[%s4130_s10 + $0x50] sm:$0xff] }
  0x1e   : > { %3094 = vmatpush3.bf16.msra.mxu1 %v3091_v23  ;;  %v3171_v23 = vpack.c.bf16 %v837_v22, %v836_v21  ;;  %v425_v50 = vld [vmem:[%s4130_s10] sm:$0xff]  ;;  %v430_v57 = vld [vmem:[%s4130_s10 + $0x28] sm:$0xff]  ;;  %v439_v8 = vld [vmem:[%s4130_s10 + $0x70] sm:$0xff] }
  0x1f   : > { %3096 = vmatprep.subr.bf16.mxu1 %v3095_v26  ;;  %v3039_v53 = vpack.c.bf16 %v426_v51, %v425_v50  ;;  %v429_v56 = vld [vmem:[%s4130_s10 + $0x20] sm:$0xff]  ;;  %v438_v6 = vld [vmem:[%s4130_s10 + $0x68] sm:$0xff]  ;;  %v440_v9 = vld [vmem:[%s4130_s10 + $0x78] sm:$0xff] }
  0x20   : > { %v3047_v59 = vpack.c.bf16 %v430_v57, %v429_v56  ;;  %v433_v63 = vld [vmem:[%s4130_s10 + $0x40] sm:$0xff]  ;;  %v2319_v50 = vld [vmem:[%s4125_s5 + $0x98] sm:$0xff] }
  0x21   : > { %3040 = vmatprep.subr.bf16.mxu0 %v3039_v53  ;;  %v437_v5 = vld [vmem:[%s4130_s10 + $0x60] sm:$0xff] }
  0x22   : > { %3098 = vmatpush3.bf16.msra.mxu1 %v3095_v26  ;;  %v3175_v26 = vpack.c.bf16 %v2292_v25, %v2291_v24  ;;  %3042 = vmatpush3.bf16.msra.mxu0 %v3039_v53  ;;  %v1114_v11 = vld [vmem:[%s4123_s3] sm:$0xff]  ;;  %v1115_v25 = vld [vmem:[%s4123_s3 + $0x8] sm:$0xff] }
  0x23   : > { %3100 = vmatprep.subr.bf16.mxu1 %v3099_v29 }
  0x26   : > { %3102 = vmatpush3.bf16.msra.mxu1 %v3099_v29  ;;  %v821_v29 = vld [vmem:[#allocation2 + $0x10] sm:$0xff] }
  0x29   : > { %2672 = vmatmul.mubr.f32.vlgmr.msra.gmra.mrb[0].mxu1 %v3536_v12 }
  0x2a   : > { %2678 = vmatprep.mubr.msk.f32.mxu1 %vm613_vm2, %v2247_v30  ;;  %v3179_v30 = vpack.c.bf16 %v2294_v28, %v2293_v27  ;;  %v1117_v27 = vld [vmem:[%s4123_s3 + $0x18] sm:$0xff]  ;;  %v1215_v28 = vld [vmem:[%s4124_s4] sm:$0xff] }
  0xfc   : > { %v2673_v34 = vpop.f32.mrb[0].mxu1 }
  0xfd   : > { %v604_v35 = vpop.f32.mrb[1].mxu1 }
  0xfe   : > { %v3103_v36 = vpack.c.bf16 %v2673_v34, %v604_v35  ;;  %v3183_v34 = vpack.c.bf16 %v2296_v33, %v2295_v32  ;;  %v2297_v35 = vld [vmem:[%s4121_s1 + $0x130] sm:$0xff] }
 0x100   : > { %3104 = vmatprep.subr.bf16.mxu1 %v3103_v36 }
 0x101   : > { %3106 = vmatpush3.bf16.msra.mxu1 %v3103_v36  ;;  %v2298_v36 = vld [vmem:[%s4121_s1 + $0x138] sm:$0xff] }
 0x102   : > { %3112 = vmatprep.subr.bf16.mxu1 %v3111_v37 }
 0x104   : > { %2679 = vmatmul.mubr.msk.f32.vlgmr.msra.gmra.mrb[2].mxu1 %vm613_vm2, %v2248_v40  ;;  %v3191_v40 = vpack.c.bf16 %v2300_v39, %v2299_v38  ;;  %v423_v38 = vld [vmem:[%s4129_s9 + $0x10] sm:$0xff]  ;;  %v1219_v39 = vld [vmem:[%s4124_s4 + $0x20] sm:$0xff] }
 0x105   : > { %3114 = vmatpush3.bf16.msra.mxu1 %v3111_v37  ;;  %2681 = vmatprep.mubr.msk.f32.mxu1 %vm613_vm2, %v2249_v42  ;;  %v3187_v37 = vpack.c.bf16 %v2298_v36, %v2297_v35  ;;  %v2302_v42 = vld [vmem:[%s4121_s1 + $0x158] sm:$0xff]  ;;  %v422_v36 = vld [vmem:[%s4129_s9 + $0x8] sm:$0xff] }
 0x106   : > { %3116 = vmatprep.subr.bf16.mxu1 %v3115_v41  ;;  %v1218_v35 = vld [vmem:[%s4124_s4 + $0x18] sm:$0xff] }
 0x108   : > { %2682 = vmatmul.mubr.msk.f32.gmra.mrb[4].mxu1 %vm613_vm2, %v2250_v45  ;;  %v2304_v45 = vld [vmem:[%s4121_s1 + $0x168] sm:$0xff] }
 0x109   : > { %3118 = vmatpush3.bf16.msra.mxu1 %v3115_v41  ;;  %2726 = vmatprep.mubr.f32.mxu1 %v3546_v18  ;;  %v834_v18 = vld [vmem:[%s4121_s1 + $0x60] sm:$0xff]  ;;  %v2301_v41 = vld [vmem:[%s4121_s1 + $0x150] sm:$0xff] }
 0x10a   : > { %3120 = vmatprep.subr.bf16.mxu1 %v3119_v46  ;;  %v3195_v43 = vpack.c.bf16 %v2302_v42, %v2301_v41  ;;  %v424_v41 = vld [vmem:[%s4129_s9 + $0x18] sm:$0xff] }
 0x10d   : > { %3122 = vmatpush3.bf16.msra.mxu1 %v3119_v46  ;;  %v3199_v46 = vpack.c.bf16 %v2304_v45, %v2303_v44  ;;  %v1222_v44 = vld [vmem:[%s4124_s4 + $0x38] sm:$0xff] }
 0x10e   : > { %3124 = vmatprep.subr.bf16.mxu1 %v3123_v49 }
 0x111   : > { %3126 = vmatpush3.bf16.msra.mxu1 %v3123_v49  ;;  %v3203_v49 = vpack.c.bf16 %v2306_v48, %v2305_v47  ;;  %v2317_v47 = vld [vmem:[%s4125_s5 + $0x88] sm:$0xff] }
 0x112   : > { %3128 = vmatprep.subr.bf16.mxu1 %v3127_v52 }
 0x115   : > { %3130 = vmatpush3.bf16.msra.mxu1 %v3127_v52  ;;  %v427_v52 = vld [vmem:[%s4130_s10 + $0x10] sm:$0xff] }
 0x116   : > { %3132 = vmatprep.subr.bf16.mxu1 %v3131_v55 }
 0x119   : > { %3134 = vmatpush3.bf16.msra.mxu1 %v3131_v55  ;;  %v3043_v55 = vpack.c.bf16 %v428_v54, %v427_v52  ;;  %v2320_v54 = vld [vmem:[%s4125_s5 + $0xa0] sm:$0xff] }
 0x11a   : > { %3136 = vmatprep.subr.bf16.mxu1 %v3135_v58 }
 0x11b   : > { %3044 = vmatprep.subr.bf16.mxu0 %v3043_v55 }
 0x11c   : > { %3046 = vmatpush3.bf16.msra.mxu0 %v3043_v55  ;;  %v2321_v55 = vld [vmem:[%s4125_s5 + $0xa8] sm:$0xff] }
 0x11d   : > { %3138 = vmatpush3.bf16.msra.mxu1 %v3135_v58  ;;  %v1008_v58 = vld [vmem:[#allocation2 + $0x12] sm:$0xff]  ;;  %3048 = vmatprep.subr.bf16.mxu0 %v3047_v59 }
 0x11e   : > { %3140 = vmatprep.subr.bf16.mxu1 %v3139_v61 }
 0x120   : > { %3050 = vmatpush3.bf16.msra.mxu0 %v3047_v59  ;;  %v2322_v59 = vld [vmem:[%s4125_s5 + $0xb0] sm:$0xff] }
 0x121   : > { %3142 = vmatpush3.bf16.msra.mxu1 %v3139_v61  ;;  %v432_v61 = vld [vmem:[%s4130_s10 + $0x38] sm:$0xff] }
 0x122   : > { %3144 = vmatprep.subr.bf16.mxu1 %v3143_v0  ;;  %v3051_v62 = vpack.c.bf16 %v432_v61, %v431_v60  ;;  %v2323_v60 = vld [vmem:[%s4125_s5 + $0xb8] sm:$0xff] }
 0x123   : > { %v3239_v61 = vpack.c.bf16 %v2323_v60, %v2322_v59  ;;  %v2336_v60 = vld [vmem:[%s4125_s5 + $0x120] sm:$0xff] }
 0x124   : > { %2727 = vmatmul.mubr.f32.vlgmr.msra.gmra.mrb[6].mxu1 %v3549_v19  ;;  %v835_v19 = vld [vmem:[%s4121_s1 + $0x68] sm:$0xff]  ;;  %3052 = vmatprep.subr.bf16.mxu0 %v3051_v62 }
 0x125   : > { %3146 = vmatpush3.bf16.msra.mxu1 %v3143_v0  ;;  %2761 = vmatprep.mubr.f32.mxu1 %v820_v4  ;;  %v3167_v20 = vpack.c.bf16 %v835_v19, %v834_v18  ;;  %v434_v0 = vld [vmem:[%s4130_s10 + $0x48] sm:$0xff] }
 0x126   : > { %3148 = vmatprep.subr.bf16.mxu1 %v3147_v3  ;;  %v3055_v1 = vpack.c.bf16 %v434_v0, %v433_v63  ;;  %3054 = vmatpush3.bf16.msra.mxu0 %v3051_v62  ;;  %v2324_v62 = vld [vmem:[%s4125_s5 + $0xc0] sm:$0xff]  ;;  %v2325_v63 = vld [vmem:[%s4125_s5 + $0xc8] sm:$0xff] }
 0x127   : > { %v3243_v0 = vpack.c.bf16 %v2325_v63, %v2324_v62 }
 0x128   : > { %3056 = vmatprep.subr.bf16.mxu0 %v3055_v1 }
 0x129   : > { %3150 = vmatpush3.bf16.msra.mxu1 %v3147_v3  ;;  %v436_v3 = vld [vmem:[%s4130_s10 + $0x58] sm:$0xff] }
 0x12a   : > { %3152 = vmatprep.subr.bf16.mxu1 %v3151_v7  ;;  %v3059_v4 = vpack.c.bf16 %v436_v3, %v435_v2  ;;  %3058 = vmatpush3.bf16.msra.mxu0 %v3055_v1  ;;  %v2326_v1 = vld [vmem:[%s4125_s5 + $0xd0] sm:$0xff]  ;;  %v2327_v2 = vld [vmem:[%s4125_s5 + $0xd8] sm:$0xff] }
 0x12b   : > { %v3247_v3 = vpack.c.bf16 %v2327_v2, %v2326_v1  ;;  %v2339_v1 = vld [vmem:[%s4125_s5 + $0x138] sm:$0xff] }
 0x12c   : > { %3060 = vmatprep.subr.bf16.mxu0 %v3059_v4 }
 0x12d   : > { %3154 = vmatpush3.bf16.msra.mxu1 %v3151_v7  ;;  %v3063_v7 = vpack.c.bf16 %v438_v6, %v437_v5  ;;  %v2329_v5 = vld [vmem:[%s4125_s5 + $0xe8] sm:$0xff] }
 0x12e   : > { %3156 = vmatprep.subr.bf16.mxu1 %v3155_v10  ;;  %3062 = vmatpush3.bf16.msra.mxu0 %v3059_v4  ;;  %v2328_v4 = vld [vmem:[%s4125_s5 + $0xe0] sm:$0xff] }
 0x12f   : > { %3064 = vmatprep.subr.bf16.mxu0 %v3063_v7  ;;  %v3251_v6 = vpack.c.bf16 %v2329_v5, %v2328_v4  ;;  %v2340_v4 = vld [vmem:[%s4125_s5 + $0x140] sm:$0xff]  ;;  %v2341_v5 = vld [vmem:[%s4125_s5 + $0x148] sm:$0xff] }
 0x131   : > { %3158 = vmatpush3.bf16.msra.mxu1 %v3155_v10  ;;  %v3067_v10 = vpack.c.bf16 %v440_v9, %v439_v8  ;;  %v2331_v8 = vld [vmem:[%s4125_s5 + $0xf8] sm:$0xff] }
 0x132   : > { %3160 = vmatprep.subr.bf16.mxu1 %v3159_v14  ;;  %3066 = vmatpush3.bf16.msra.mxu0 %v3063_v7  ;;  %v2330_v7 = vld [vmem:[%s4125_s5 + $0xf0] sm:$0xff] }
 0x133   : > { %3068 = vmatprep.subr.bf16.mxu0 %v3067_v10  ;;  %v3255_v9 = vpack.c.bf16 %v2331_v8, %v2330_v7  ;;  %v2342_v7 = vld [vmem:[%s4125_s5 + $0x150] sm:$0xff]  ;;  %v2343_v8 = vld [vmem:[%s4125_s5 + $0x158] sm:$0xff] }
 0x135   : > { %3162 = vmatpush3.bf16.msra.mxu1 %v3159_v14  ;;  %v421_v14 = vld [vmem:[%s4129_s9] sm:$0xff] }
 0x136   : > { %3164 = vmatprep.subr.bf16.mxu1 %v3163_v17  ;;  %3070 = vmatpush3.bf16.msra.mxu0 %v3067_v10  ;;  %v1333_v10 = vld [vmem:[%s4125_s5] sm:$0xff] }
 0x139   : > { %3166 = vmatpush3.bf16.msra.mxu1 %v3163_v17  ;;  %2637 = vmatmul.mubr.f32.vlgmr.msra.gmra.mrb[0].mxu0 %v3536_v12  ;;  %v2307_v12 = vld [vmem:[%s4122_s2] ss:$0 sm:$0xff] }
 0x13a   : > { %3168 = vmatprep.subr.bf16.mxu1 %v3167_v20  ;;  %2688 = vmatprep.mubr.msk.f32.mxu0 %vm613_vm2, %v421_v14 }
 0x13d   : > { %3170 = vmatpush3.bf16.msra.mxu1 %v3167_v20 }
 0x13e   : > { %3172 = vmatprep.subr.bf16.mxu1 %v3171_v23 }
 0x141   : > { %3174 = vmatpush3.bf16.msra.mxu1 %v3171_v23 }
 0x142   : > { %3176 = vmatprep.subr.bf16.mxu1 %v3175_v26 }
 0x144   : > { %2762 = vmatmul.mubr.f32.vlgmr.msra.gmra.mrb[6].mxu1 %v821_v29  ;;  %v1216_v29 = vld [vmem:[%s4124_s4 + $0x8] sm:$0xff] }
 0x145   : > { %3178 = vmatpush3.bf16.msra.mxu1 %v3175_v26  ;;  %2796 = vmatprep.mubr.f32.mxu1 %v1007_v31  ;;  %v1116_v26 = vld [vmem:[%s4123_s3 + $0x10] sm:$0xff]  ;;  %v3211_v33 = vpack.c.bf16 %v1216_v29, %v1215_v28 }
 0x146   : > { %3180 = vmatprep.subr.bf16.mxu1 %v3179_v30 }
 0x149   : > { %3182 = vmatpush3.bf16.msra.mxu1 %v3179_v30 }
 0x14a   : > { %3184 = vmatprep.subr.bf16.mxu1 %v3183_v34 }
 0x14d   : > { %3186 = vmatpush3.bf16.msra.mxu1 %v3183_v34  ;;  %v1217_v34 = vld [vmem:[%s4124_s4 + $0x10] sm:$0xff] }
 0x14e   : > { %3188 = vmatprep.subr.bf16.mxu1 %v3187_v37 }
 0x151   : > { %3190 = vmatpush3.bf16.msra.mxu1 %v3187_v37  ;;  %v3215_v37 = vpack.c.bf16 %v1218_v35, %v1217_v34 }
 0x152   : > { %3192 = vmatprep.subr.bf16.mxu1 %v3191_v40 }
 0x155   : > { %3194 = vmatpush3.bf16.msra.mxu1 %v3191_v40  ;;  %v1220_v40 = vld [vmem:[%s4124_s4 + $0x28] sm:$0xff] }
 0x156   : > { %3196 = vmatprep.subr.bf16.mxu1 %v3195_v43  ;;  %v3219_v42 = vpack.c.bf16 %v1220_v40, %v1219_v39  ;;  %v1341_v40 = vld [vmem:[%s4125_s5 + $0x40] sm:$0xff] }
 0x159   : > { %3198 = vmatpush3.bf16.msra.mxu1 %v3195_v43  ;;  %v1221_v43 = vld [vmem:[%s4124_s4 + $0x30] sm:$0xff] }
 0x15a   : > { %3200 = vmatprep.subr.bf16.mxu1 %v3199_v46  ;;  %v3223_v45 = vpack.c.bf16 %v1222_v44, %v1221_v43  ;;  %v1343_v43 = vld [vmem:[%s4125_s5 + $0x50] sm:$0xff]  ;;  %v1344_v44 = vld [vmem:[%s4125_s5 + $0x58] sm:$0xff] }
 0x15d   : > { %3202 = vmatpush3.bf16.msra.mxu1 %v3199_v46  ;;  %v2316_v46 = vld [vmem:[%s4125_s5 + $0x80] sm:$0xff] }
 0x15e   : > { %3204 = vmatprep.subr.bf16.mxu1 %v3203_v49  ;;  %v3227_v48 = vpack.c.bf16 %v2317_v47, %v2316_v46  ;;  %v1345_v46 = vld [vmem:[%s4125_s5 + $0x60] sm:$0xff]  ;;  %v1346_v47 = vld [vmem:[%s4125_s5 + $0x68] sm:$0xff] }
 0x161   : > { %3206 = vmatpush3.bf16.msra.mxu1 %v3203_v49  ;;  %v2318_v49 = vld [vmem:[%s4125_s5 + $0x90] sm:$0xff] }
 0x162   : > { %v3231_v53 = vpack.c.bf16 %v2319_v50, %v2318_v49  ;;  %v1347_v49 = vld [vmem:[%s4125_s5 + $0x70] sm:$0xff]  ;;  %v1348_v50 = vld [vmem:[%s4125_s5 + $0x78] sm:$0xff] }
 0x164   : > { %2797 = vmatmul.mubr.f32.vlgmr.msra.gmra.mrb[6].mxu1 %v1008_v58  ;;  %v3235_v58 = vpack.c.bf16 %v2321_v55, %v2320_v54  ;;  %v2334_v55 = vld [vmem:[%s4125_s5 + $0x110] sm:$0xff] }
 0x165   : > { %2803 = vmatprep.mubr.msk.f32.mxu1 %vm613_vm2, %v1114_v11  ;;  %v1334_v11 = vld [vmem:[%s4125_s5 + $0x8] sm:$0xff] }
 0x166   : > { %v3259_v14 = vpack.c.bf16 %v1334_v11, %v1333_v10  ;;  %v2344_v10 = vld [vmem:[%s4125_s5 + $0x160] sm:$0xff]  ;;  %v2345_v11 = vld [vmem:[%s4125_s5 + $0x168] sm:$0xff] }
 0x1d7   : > { %v3787_v13 = vpop.f32.mrb[2].mxu1 }
 0x1d8   : > { %v3792_v15 = vpop.f32.mrb[3].mxu1 }
 0x1db   : > { %v3795_v16 = vpop.f32.mrb[4].mxu1 }
 0x1dc   : > { %v3797_v17 = vpop.f32.mrb[5].mxu1 }
 0x20c   : > { %v2638_v30 = vpop.f32.mrb[0].mxu0 }
 0x20d   : > { %v507_v31 = vpop.f32.mrb[1].mxu0 }
 0x20e   : > { %v3107_v32 = vpack.c.bf16 %v2638_v30, %v507_v31  ;;  %v1337_v31 = vld [vmem:[%s4125_s5 + $0x20] sm:$0xff] }
 0x210   : > { %3108 = vmatprep.subr.bf16.mxu0 %v3107_v32 }
 0x211   : > { %3110 = vmatpush3.bf16.msra.mxu0 %v3107_v32  ;;  %v1338_v32 = vld [vmem:[%s4125_s5 + $0x28] sm:$0xff] }
 0x212   : > { %3212 = vmatprep.subr.bf16.mxu0 %v3211_v33  ;;  %v3267_v35 = vpack.c.bf16 %v1338_v32, %v1337_v31 }
 0x214   : > { %2689 = vmatmul.mubr.msk.f32.vlgmr.msra.gmra.mrb[2].mxu0 %vm613_vm2, %v422_v36  ;;  %v1339_v36 = vld [vmem:[%s4125_s5 + $0x30] sm:$0xff] }
 0x215   : > { %3214 = vmatpush3.bf16.msra.mxu0 %v3211_v33  ;;  %2691 = vmatprep.mubr.msk.f32.mxu0 %vm613_vm2, %v423_v38 }
 0x216   : > { %3216 = vmatprep.subr.bf16.mxu0 %v3215_v37 }
 0x218   : > { %2692 = vmatmul.mubr.msk.f32.gmra.mrb[4].mxu0 %vm613_vm2, %v424_v41  ;;  %v1342_v41 = vld [vmem:[%s4125_s5 + $0x48] sm:$0xff] }
 0x219   : > { %3218 = vmatpush3.bf16.msra.mxu0 %v3215_v37  ;;  %v1340_v37 = vld [vmem:[%s4125_s5 + $0x38] sm:$0xff] }
 0x21a   : > { %3220 = vmatprep.subr.bf16.mxu0 %v3219_v42  ;;  %v3271_v39 = vpack.c.bf16 %v1340_v37, %v1339_v36 }
 0x21d   : > { %3222 = vmatpush3.bf16.msra.mxu0 %v3219_v42  ;;  %v3275_v42 = vpack.c.bf16 %v1342_v41, %v1341_v40 }
 0x21e   : > { %3224 = vmatprep.subr.bf16.mxu0 %v3223_v45 }
 0x221   : > { %3226 = vmatpush3.bf16.msra.mxu0 %v3223_v45  ;;  %v3279_v45 = vpack.c.bf16 %v1344_v44, %v1343_v43 }
 0x222   : > { %3228 = vmatprep.subr.bf16.mxu0 %v3227_v48 }
 0x237   : > { %v2798_v18 = vpop.f32.mrb[6].mxu1 }
 0x238   : > { %v1111_v19 = vadd.f32 %v2798_v18, %v2307_v12  ;;  %v1092_v20 = vpop.f32.mrb[7].mxu1  ;;  %v1666_v18 = vld [vmem:[%s4127_s7 + $0x8] sm:$0xff] }
 0x239   : > { %v1110_v21 = vadd.f32 %v2307_v12, %v1092_v20  ;;  %v1665_v12 = vld [vmem:[%s4127_s7] sm:$0xff] }
 0x23a   : > { %v1113_v22 = vmax.f32 %v1111_v19, 0.0  ;;  %v1667_v19 = vld [vmem:[%s4127_s7 + $0x10] sm:$0xff]  ;;  %v3917_v20 = vpack.c.bf16 %v1666_v18, %v1665_v12  ;;  %v2347_v18 = vld [vmem:[%s4125_s5 + $0x178] sm:$0xff] }
 0x23b   : > { %v1112_v23 = vmax.f32 %v1110_v21, 0.0  ;;  %v1668_v21 = vld [vmem:[%s4127_s7 + $0x18] sm:$0xff]  ;;  %v2346_v12 = vld [vmem:[%s4125_s5 + $0x170] sm:$0xff] }
 0x23d   : > { %v3207_v24 = vpack.c.bf16 %v1113_v22, %v1112_v23  ;;  %v3922_v22 = vpack.c.bf16 %v1668_v21, %v1667_v19  ;;  %v1669_v23 = vld [vmem:[%s4127_s7 + $0x20] sm:$0xff]  ;;  %v3319_v19 = vpack.c.bf16 %v2347_v18, %v2346_v12 }
 0x23f   : > { %3208 = vmatprep.subr.bf16.mxu1 %v3207_v24 }
 0x240   : > { %3210 = vmatpush3.bf16.msra.mxu1 %v3207_v24  ;;  %v1670_v24 = vld [vmem:[%s4127_s7 + $0x28] sm:$0xff] }
 0x241   : > { %3324 = vmatprep.subr.bf16.mxu1 %v3917_v20 }
 0x243   : > { %2804 = vmatmul.mubr.msk.f32.vlgmr.msra.gmra.mrb[8].mxu1 %vm613_vm2, %v1115_v25  ;;  %v3933_v25 = vpack.c.bf16 %v1670_v24, %v1669_v23 }
 0x244   : > { %2806 = vmatprep.mubr.msk.f32.mxu1 %vm613_vm2, %v1116_v26  ;;  %3326 = vmatpush3.bf16.msra.mxu1 %v3917_v20  ;;  %v1335_v26 = vld [vmem:[%s4125_s5 + $0x10] sm:$0xff] }
 0x245   : > { %3328 = vmatprep.subr.bf16.mxu1 %v3922_v22 }
 0x247   : > { %2807 = vmatmul.mubr.msk.f32.gmra.mrb[10].mxu1 %vm613_vm2, %v1117_v27  ;;  %v1336_v27 = vld [vmem:[%s4125_s5 + $0x18] sm:$0xff] }
 0x248   : > { %3330 = vmatpush3.bf16.msra.mxu1 %v3922_v22  ;;  %v3263_v30 = vpack.c.bf16 %v1336_v27, %v1335_v26  ;;  %v1671_v26 = vld [vmem:[%s4127_s7 + $0x30] sm:$0xff]  ;;  %v1672_v27 = vld [vmem:[%s4127_s7 + $0x38] sm:$0xff] }
 0x249   : > { %3332 = vmatprep.subr.bf16.mxu1 %v3933_v25 }
 0x24c   : > { %3334 = vmatpush3.bf16.msra.mxu1 %v3933_v25 }
 0x316   : > { %v2805_v51 = vpop.f32.mrb[8].mxu1 }
 0x317   : > { %v1196_v52 = vpop.f32.mrb[9].mxu1 }
 0x318   : > { %2825 = vmatprep.mubr.msk.f32.mxu0 %vm1223_vm3, %v1196_v52  ;;  %v2332_v52 = vld [vmem:[%s4125_s5 + $0x100] sm:$0xff] }
 0x319   : > { %2826 = vmatmul.mubr.msk.f32.vlgmr.msra.gmra.mrb[6].mxu0 %vm1223_vm3, %v2805_v51  ;;  %v3287_v51 = vpack.c.bf16 %v1348_v50, %v1347_v49 }
 0x31a   : > { %v2808_v56 = vpop.f32.mrb[10].mxu1  ;;  %3230 = vmatpush3.bf16.msra.mxu0 %v3227_v48  ;;  %v3283_v48 = vpack.c.bf16 %v1346_v47, %v1345_v46  ;;  %v1663_v46 = vld [vmem:[%s4128_s8 + $0x10] sm:$0xff]  ;;  %v1664_v47 = vld [vmem:[%s4128_s8 + $0x18] sm:$0xff] }
 0x31b   : > { %v1206_v57 = vpop.f32.mrb[11].mxu1  ;;  %3232 = vmatprep.subr.bf16.mxu0 %v3231_v53 }
 0x31c   : > { %2828 = vmatprep.mubr.msk.f32.mxu0 %vm1223_vm3, %v1206_v57 }
 0x31d   : > { %2829 = vmatmul.mubr.msk.f32.gmra.mrb[8].mxu0 %vm1223_vm3, %v2808_v56  ;;  %v2335_v56 = vld [vmem:[%s4125_s5 + $0x118] sm:$0xff] }
 0x31e   : > { %3234 = vmatpush3.bf16.msra.mxu0 %v3231_v53  ;;  %v2333_v53 = vld [vmem:[%s4125_s5 + $0x108] sm:$0xff] }
 0x31f   : > { %3236 = vmatprep.subr.bf16.mxu0 %v3235_v58  ;;  %v3291_v54 = vpack.c.bf16 %v2333_v53, %v2332_v52 }
 0x322   : > { %3238 = vmatpush3.bf16.msra.mxu0 %v3235_v58  ;;  %v3295_v58 = vpack.c.bf16 %v2335_v56, %v2334_v55 }
 0x323   : > { %3240 = vmatprep.subr.bf16.mxu0 %v3239_v61 }
 0x326   : > { %3242 = vmatpush3.bf16.msra.mxu0 %v3239_v61  ;;  %v2337_v61 = vld [vmem:[%s4125_s5 + $0x128] sm:$0xff] }
 0x327   : > { %3244 = vmatprep.subr.bf16.mxu0 %v3243_v0  ;;  %v3299_v62 = vpack.c.bf16 %v2337_v61, %v2336_v60 }
 0x32a   : > { %3246 = vmatpush3.bf16.msra.mxu0 %v3243_v0  ;;  %v2338_v0 = vld [vmem:[%s4125_s5 + $0x130] sm:$0xff] }
 0x32b   : > { %3248 = vmatprep.subr.bf16.mxu0 %v3247_v3 }
 0x32e   : > { %3250 = vmatpush3.bf16.msra.mxu0 %v3247_v3  ;;  %v3303_v3 = vpack.c.bf16 %v2339_v1, %v2338_v0  ;;  %v2067_v0 = vld [vmem:[%s4131_s11 + $0x8] sm:$0xff] }
 0x32f   : > { %3252 = vmatprep.subr.bf16.mxu0 %v3251_v6 }
 0x332   : > { %3254 = vmatpush3.bf16.msra.mxu0 %v3251_v6  ;;  %v3307_v6 = vpack.c.bf16 %v2341_v5, %v2340_v4  ;;  %v2070_v5 = vld [vmem:[%s4131_s11 + $0x20] sm:$0xff] }
 0x333   : > { %3256 = vmatprep.subr.bf16.mxu0 %v3255_v9 }
 0x336   : > { %3258 = vmatpush3.bf16.msra.mxu0 %v3255_v9  ;;  %v3311_v9 = vpack.c.bf16 %v2343_v8, %v2342_v7  ;;  %v2072_v8 = vld [vmem:[%s4131_s11 + $0x30] sm:$0xff] }
 0x337   : > { %3260 = vmatprep.subr.bf16.mxu0 %v3259_v14 }
 0x3ec   : > { %v2827_v28 = vpop.f32.mrb[6].mxu0 }
 0x3ed   : > { %1326 = vst [vmem:[#allocation3 + $0x9] sm:$0xff] %v2827_v28  ;;  %v1302_v29 = vpop.f32.mrb[7].mxu0 }
 0x3ee   : > { %1325 = vst [vmem:[#allocation3 + $0x1] sm:$0xff] %v1302_v29  ;;  %2863 = vmatprep.mubr.f32.mxu0 %v1302_v29  ;;  %v2348_v29 = vld [vmem:[%s4126_s6] ss:$0 sm:$0xff] }
 0x3ef   : > { %2864 = vmatmul.mubr.f32.vlgmr.msra.gmra.mrb[10].mxu0 %v2827_v28  ;;  %v3335_v28 = vpack.c.bf16 %v1672_v27, %v1671_v26 }
 0x3f0   : > { %v2830_v33 = vpop.f32.mrb[8].mxu0  ;;  %3262 = vmatpush3.bf16.msra.mxu0 %v3259_v14  ;;  %v3315_v14 = vpack.c.bf16 %v2345_v11, %v2344_v10 }
 0x3f1   : > { %1328 = vst [vmem:[#allocation3 + $0x21] sm:$0xff] %v2830_v33  ;;  %v1312_v34 = vpop.f32.mrb[9].mxu0  ;;  %3264 = vmatprep.subr.bf16.mxu0 %v3263_v30  ;;  %3336 = vmatprep.subr.bf16.mxu1 %v3335_v28 }
 0x3f2   : > { %1327 = vst [vmem:[#allocation3 + $0x19] sm:$0xff] %v1312_v34  ;;  %2866 = vmatprep.mubr.f32.mxu0 %v1312_v34  ;;  %3338 = vmatpush3.bf16.msra.mxu1 %v3335_v28 }
 0x3f3   : > { %2867 = vmatmul.mubr.f32.gmra.mrb[12].mxu0 %v2830_v33 }
 0x3f4   : > { %3266 = vmatpush3.bf16.msra.mxu0 %v3263_v30  ;;  %v1541_v21 = vld [vmem:[#allocation3 + $0xa] sm:$0xff] }
 0x3f5   : > { %v1329_v38 = vld [vmem:[#allocation3] sm:$0xff]  ;;  %3268 = vmatprep.subr.bf16.mxu0 %v3267_v35  ;;  %v1330_v59 = vld [vmem:[#allocation3 + $0x8] sm:$0xff] }
 0x3f6   : > { %2901 = vmatprep.mubr.f32.mxu0 %v1329_v38  ;;  %v1540_v2 = vld [vmem:[#allocation3 + $0x2] sm:$0xff] }
 0x3f7   : > { %v1661_v38 = vld [vmem:[%s4128_s8] sm:$0xff] }
 0x3f8   : > { %3270 = vmatpush3.bf16.msra.mxu0 %v3267_v35  ;;  %v1543_v24 = vld [vmem:[#allocation3 + $0x22] sm:$0xff] }
 0x3f9   : > { %3272 = vmatprep.subr.bf16.mxu0 %v3271_v39  ;;  %v1331_v57 = vld [vmem:[#allocation3 + $0x18] sm:$0xff]  ;;  %v1332_v63 = vld [vmem:[#allocation3 + $0x20] sm:$0xff] }
 0x3fa   : > { %v1542_v23 = vld [vmem:[#allocation3 + $0x1a] sm:$0xff] }
 0x3fc   : > { %3274 = vmatpush3.bf16.msra.mxu0 %v3271_v39 }
 0x3fd   : > { %3276 = vmatprep.subr.bf16.mxu0 %v3275_v42 }
 0x400   : > { %3278 = vmatpush3.bf16.msra.mxu0 %v3275_v42 }
 0x401   : > { %3280 = vmatprep.subr.bf16.mxu0 %v3279_v45 }
 0x404   : > { %3282 = vmatpush3.bf16.msra.mxu0 %v3279_v45  ;;  %v1662_v45 = vld [vmem:[%s4128_s8 + $0x8] sm:$0xff] }
 0x405   : > { %3284 = vmatprep.subr.bf16.mxu0 %v3283_v48 }
 0x408   : > { %3286 = vmatpush3.bf16.msra.mxu0 %v3283_v48 }
 0x409   : > { %3288 = vmatprep.subr.bf16.mxu0 %v3287_v51 }
 0x40c   : > { %3290 = vmatpush3.bf16.msra.mxu0 %v3287_v51 }
 0x40d   : > { %3292 = vmatprep.subr.bf16.mxu0 %v3291_v54 }
 0x40f   : > { %2902 = vmatmul.mubr.f32.vlgmr.msra.gmra.mrb[10].mxu0 %v1330_v59 }
 0x410   : > { %2904 = vmatprep.mubr.f32.mxu0 %v1331_v57  ;;  %3294 = vmatpush3.bf16.msra.mxu0 %v3291_v54 }
 0x411   : > { %3296 = vmatprep.subr.bf16.mxu0 %v3295_v58 }
 0x413   : > { %2905 = vmatmul.mubr.f32.gmra.mrb[12].mxu0 %v1332_v63  ;;  %v2066_v63 = vld [vmem:[%s4131_s11] sm:$0xff] }
 0x414   : > { %3298 = vmatpush3.bf16.msra.mxu0 %v3295_v58  ;;  %2939 = vmatprep.mubr.f32.mxu0 %v1540_v2  ;;  %v3371_v1 = vpack.c.bf16 %v2067_v0, %v2066_v63  ;;  %v2068_v2 = vld [vmem:[%s4131_s11 + $0x10] sm:$0xff] }
 0x415   : > { %3300 = vmatprep.subr.bf16.mxu0 %v3299_v62 }
 0x418   : > { %3302 = vmatpush3.bf16.msra.mxu0 %v3299_v62 }
 0x419   : > { %3304 = vmatprep.subr.bf16.mxu0 %v3303_v3 }
 0x41c   : > { %3306 = vmatpush3.bf16.msra.mxu0 %v3303_v3  ;;  %v2069_v3 = vld [vmem:[%s4131_s11 + $0x18] sm:$0xff] }
 0x41d   : > { %3308 = vmatprep.subr.bf16.mxu0 %v3307_v6  ;;  %v3375_v4 = vpack.c.bf16 %v2069_v3, %v2068_v2 }
 0x420   : > { %3310 = vmatpush3.bf16.msra.mxu0 %v3307_v6  ;;  %v2071_v6 = vld [vmem:[%s4131_s11 + $0x28] sm:$0xff] }
 0x421   : > { %3312 = vmatprep.subr.bf16.mxu0 %v3311_v9  ;;  %v3379_v7 = vpack.c.bf16 %v2071_v6, %v2070_v5 }
 0x424   : > { %3314 = vmatpush3.bf16.msra.mxu0 %v3311_v9  ;;  %v2073_v9 = vld [vmem:[%s4131_s11 + $0x38] sm:$0xff] }
 0x425   : > { %3316 = vmatprep.subr.bf16.mxu0 %v3315_v14  ;;  %v3383_v10 = vpack.c.bf16 %v2073_v9, %v2072_v8 }
 0x428   : > { %3318 = vmatpush3.bf16.msra.mxu0 %v3315_v14 }
 0x429   : > { %3320 = vmatprep.subr.bf16.mxu0 %v3319_v19 }
 0x42c   : > { %3322 = vmatpush3.bf16.msra.mxu0 %v3319_v19 }
 0x42f   : > { %2940 = vmatmul.mubr.f32.vlgmr.msra.gmra.mrb[10].mxu0 %v1541_v21 }
 0x430   : > { %2942 = vmatprep.mubr.f32.mxu0 %v1542_v23 }
 0x433   : > { %2943 = vmatmul.mubr.f32.gmra.mrb[12].mxu0 %v1543_v24 }
 0x434   : > { %3011 = vmatprep.mubr.msk.f32.mxu0 %vm1770_vm4, %v1661_v38 }
 0x502   : > { %v2941_v30 = vpop.f32.mrb[10].mxu0 }
 0x503   : > { %v1627_v31 = vpop.f32.mrb[11].mxu0  ;;  %v1658_v33 = vadd.f32 %v2941_v30, %v2348_v29 }
 0x504   : > { %v1657_v32 = vadd.f32 %v2348_v29, %v1627_v31 }
 0x506   : > { %v2944_v34 = vpop.f32.mrb[12].mxu0  ;;  %2961 = vmatprep.mubr.msk.f32.mxu1 %vm1223_vm3, %v1657_v32 }
 0x507   : > { %v1637_v35 = vpop.f32.mrb[13].mxu0  ;;  %2962 = vmatmul.mubr.msk.f32.vlgmr.msra.gmra.mrb[12].mxu1 %vm1223_vm3, %v1658_v33  ;;  %v1660_v37 = vadd.f32 %v2944_v34, %v2348_v29 }
 0x508   : > { %v1659_v36 = vadd.f32 %v2348_v29, %v1637_v35 }
 0x50a   : > { %2964 = vmatprep.mubr.msk.f32.mxu1 %vm1223_vm3, %v1659_v36 }
 0x50b   : > { %2965 = vmatmul.mubr.msk.f32.gmra.mrb[14].mxu1 %vm1223_vm3, %v1660_v37 }
 0x50c   : > { %2975 = vmatprep.mubr.msk.f32.mxu1 %vm1770_vm4, %v1661_v38 }
 0x5da   : > { %v2963_v39 = vpop.f32.mrb[12].mxu1 }
 0x5db   : > { %v1751_v40 = vpop.f32.mrb[13].mxu1 }
 0x5dc   : > { %v3339_v41 = vpack.c.bf16 %v2963_v39, %v1751_v40 }
 0x5de   : > { %v2966_v42 = vpop.f32.mrb[14].mxu1  ;;  %3340 = vmatprep.subr.bf16.mxu1 %v3339_v41 }
 0x5df   : > { %v1761_v43 = vpop.f32.mrb[15].mxu1  ;;  %3342 = vmatpush3.bf16.msra.mxu1 %v3339_v41 }
 0x5e0   : > { %v3343_v44 = vpack.c.bf16 %v2966_v42, %v1761_v43 }
 0x5e2   : > { %3344 = vmatprep.subr.bf16.mxu1 %v3343_v44 }
 0x5e3   : > { %3346 = vmatpush3.bf16.msra.mxu1 %v3343_v44 }
 0x5e4   : > { %3348 = vmatprep.subr.bf16.mxu1 %v3917_v20 }
 0x5e6   : > { %2976 = vmatmul.mubr.msk.f32.vlgmr.msra.gmra.mrb[16].mxu1 %vm1770_vm4, %v1662_v45 }
 0x5e7   : > { %2978 = vmatprep.mubr.msk.f32.mxu1 %vm1770_vm4, %v1663_v46  ;;  %3350 = vmatpush3.bf16.msra.mxu1 %v3917_v20 }
 0x5e8   : > { %3352 = vmatprep.subr.bf16.mxu1 %v3922_v22 }
 0x5ea   : > { %2979 = vmatmul.mubr.msk.f32.gmra.mrb[18].mxu1 %vm1770_vm4, %v1664_v47 }
 0x5eb   : > { %3354 = vmatpush3.bf16.msra.mxu1 %v3922_v22 }
 0x5ec   : > { %3356 = vmatprep.subr.bf16.mxu1 %v3933_v25 }
 0x5ef   : > { %3358 = vmatpush3.bf16.msra.mxu1 %v3933_v25 }
 0x5f0   : > { %3360 = vmatprep.subr.bf16.mxu1 %v3335_v28 }
 0x5f3   : > { %3362 = vmatpush3.bf16.msra.mxu1 %v3335_v28 }
 0x6b9   : > { %v2977_v48 = vpop.f32.mrb[16].mxu1 }
 0x6ba   : > { %v4064_v49 = vsub.f32 %v1658_v33, %v2977_v48  ;;  %v1849_v50 = vpop.f32.mrb[17].mxu1 }
 0x6bb   : > { %v1868_v51 = vsub.f32 %v1657_v32, %v1849_v50 }
 0x6bc   : > { %v1873_v20 = vmul.f32 %v4064_v49, %v4064_v49 }
 0x6bd   : > { %v1872_v52 = vmul.f32 %v1868_v51, %v1868_v51  ;;  %v2980_v53 = vpop.f32.mrb[18].mxu1 }
 0x6be   : > { %v4068_v54 = vsub.f32 %v1660_v37, %v2980_v53  ;;  %v1859_v55 = vpop.f32.mrb[19].mxu1 }
 0x6bf   : > { %v1870_v22 = vsub.f32 %v1659_v36, %v1859_v55  ;;  %2997 = vmatprep.mubr.msk.f32.mxu1 %vm1223_vm3, %v1872_v52 }
 0x6c0   : > { %2998 = vmatmul.mubr.msk.f32.vlgmr.msra.gmra.mrb[20].mxu1 %vm1223_vm3, %v1873_v20  ;;  %v1875_v56 = vmul.f32 %v4068_v54, %v4068_v54 }
 0x6c1   : > { %v1874_v25 = vmul.f32 %v1870_v22, %v1870_v22 }
 0x6c3   : > { %3000 = vmatprep.mubr.msk.f32.mxu1 %vm1223_vm3, %v1874_v25 }
 0x6c4   : > { %3001 = vmatmul.mubr.msk.f32.gmra.mrb[22].mxu1 %vm1223_vm3, %v1875_v56 }
 0x793   : > { %v2999_v57 = vpop.f32.mrb[20].mxu1 }
 0x794   : > { %v1954_v58 = vpop.f32.mrb[21].mxu1 }
 0x795   : > { %v3363_v59 = vpack.c.bf16 %v2999_v57, %v1954_v58 }
 0x797   : > { %v3002_v60 = vpop.f32.mrb[22].mxu1  ;;  %3364 = vmatprep.subr.bf16.mxu0 %v3363_v59 }
 0x798   : > { %v1964_v61 = vpop.f32.mrb[23].mxu1  ;;  %3366 = vmatpush3.bf16.msra.mxu0 %v3363_v59 }
 0x799   : > { %v3367_v62 = vpack.c.bf16 %v3002_v60, %v1964_v61 }
 0x79b   : > { %3368 = vmatprep.subr.bf16.mxu0 %v3367_v62 }
 0x79c   : > { %3370 = vmatpush3.bf16.msra.mxu0 %v3367_v62 }
 0x79d   : > { %3372 = vmatprep.subr.bf16.mxu0 %v3371_v1 }
 0x79f   : > { %3012 = vmatmul.mubr.msk.f32.vlgmr.msra.gmra.mrb[14].mxu0 %vm1770_vm4, %v1662_v45 }
 0x7a0   : > { %3014 = vmatprep.mubr.msk.f32.mxu0 %vm1770_vm4, %v1663_v46  ;;  %3374 = vmatpush3.bf16.msra.mxu0 %v3371_v1 }
 0x7a1   : > { %3376 = vmatprep.subr.bf16.mxu0 %v3375_v4 }
 0x7a3   : > { %3015 = vmatmul.mubr.msk.f32.gmra.mrb[16].mxu0 %vm1770_vm4, %v1664_v47 }
 0x7a4   : > { %3378 = vmatpush3.bf16.msra.mxu0 %v3375_v4 }
 0x7a5   : > { %3380 = vmatprep.subr.bf16.mxu0 %v3379_v7 }
 0x7a8   : > { %3382 = vmatpush3.bf16.msra.mxu0 %v3379_v7 }
 0x7a9   : > { %3384 = vmatprep.subr.bf16.mxu0 %v3383_v10 }
 0x7ac   : > { %3386 = vmatpush3.bf16.msra.mxu0 %v3383_v10 }
 0x872   : > { %v3013_v11 = vpop.f32.mrb[14].mxu0 }
 0x873   : > { %v2045_v14 = vadd.f32 1e-05, %v3013_v11  ;;  %v2039_v12 = vpop.f32.mrb[15].mxu0 }
 0x874   : > { %v2040_v18 = vadd.f32 1e-05, %v2039_v12 }
 0x875   : > { %3416 = vrsqrt.f32 %v2045_v14 }
 0x876   : > { %3418 = vrsqrt.f32 %v2040_v18  ;;  %v3016_v19 = vpop.f32.mrb[16].mxu0 }
 0x877   : > { %v2055_v21 = vadd.f32 1e-05, %v3016_v19  ;;  %v2049_v23 = vpop.f32.mrb[17].mxu0 }
 0x878   : > { %v2050_v24 = vadd.f32 1e-05, %v2049_v23 }
 0x879   : > { %3420 = vrsqrt.f32 %v2055_v21 }
 0x87a   : > { %3422 = vrsqrt.f32 %v2050_v24 }
 0x87f   : > { %v3417_v26 = vpop.eup %3416 }
 0x880   : > { %v3419_v27 = vpop.eup %3418  ;;  %v2063_v29 = vmul.f32 %v3417_v26, %v4064_v49 }
 0x881   : > { %v2062_v28 = vmul.f32 %v3419_v27, %v1868_v51 }
 0x883   : > { %v3421_v30 = vpop.eup %3420  ;;  %3033 = vmatprep.mubr.msk.f32.mxu0 %vm1223_vm3, %v2062_v28 }
 0x884   : > { %v3423_v31 = vpop.eup %3422  ;;  %3034 = vmatmul.mubr.msk.f32.vlgmr.msra.gmra.mrb[2].mxu0 %vm1223_vm3, %v2063_v29  ;;  %v2065_v33 = vmul.f32 %v3421_v30, %v4068_v54 }
 0x885   : > { %v2064_v32 = vmul.f32 %v3423_v31, %v1870_v22 }
 0x887   : > { %3036 = vmatprep.mubr.msk.f32.mxu0 %vm1223_vm3, %v2064_v32 }
 0x888   : > { %3037 = vmatmul.mubr.msk.f32.gmra.mrb[4].mxu0 %vm1223_vm3, %v2065_v33 }
 0x957   : > { %v3035_v34 = vpop.f32.mrb[2].mxu0 }
 0x958   : > { %v3387_v35 = vadd.f32 %v3035_v34, %v3787_v13  ;;  %v2152_v36 = vpop.f32.mrb[3].mxu0 }
 0x959   : > { %v3388_v37 = vadd.f32 %v2152_v36, %v3792_v15 }
 0x95a   : > { %2176 = vst [vmem:[%s417_s17 + $0x8] sm:$0xff] %v3387_v35 }
 0x95b   : > { %2175 = vst [vmem:[%s417_s17] sm:$0xff] %v3388_v37  ;;  %v3038_v38 = vpop.f32.mrb[4].mxu0 }
 0x95c   : > { %v3389_v39 = vadd.f32 %v3038_v38, %v3795_v16  ;;  %v2162_v40 = vpop.f32.mrb[5].mxu0 }
 0x95d   : > { %v3390_v41 = vadd.f32 %v2162_v40, %v3797_v17 }
 0x95e   : > { %2178 = vst [vmem:[%s417_s17 + $0x18] sm:$0xff] %v3389_v39 }
 0x95f   : > { %2177 = vst [vmem:[%s417_s17 + $0x10] sm:$0xff] %v3390_v41 }
 0x960 PF: > { %s22_s21 = sadd.s32 1, %s3430_s21  }
 0x961   : > { %p19_p4 = scmp.ge.s32.totalorder %s22_s21, 4  }
 0x963   :  { %21 = sbr.rel (!%p19_p4) target bundleno = 1 (0x1), region = 104 }

</bundles_post_ra>
